<compile_context>
chip_gen: v7x
topology: tpu7x:2x2x1
jax: 0.10.0
libtpu: 0.0.40
codegen_flags: <defaults>
</compile_context>

<pallas_src>
import math
import jax
import jax.numpy as jnp
from jax import lax
from jax.experimental import pallas as pl
from jax.experimental.pallas import tpu as pltpu

# ----------------------- small synthetic ViT config -----------------------
BATCH = 2
CHANNELS = 3
IMG = 16
PATCH = 8
GRID_HW = IMG // PATCH                  # 2
NUM_PATCHES = GRID_HW * GRID_HW         # 4
SEQ = NUM_PATCHES + 1                   # 5  (CLS + patches)
HIDDEN = 32
NUM_HEADS = 2
HEAD_DIM = HIDDEN // NUM_HEADS          # 16
INTER = 4 * HIDDEN                      # 64
NUM_LAYERS = 2
NUM_LABELS = 10
PATCH_DIM = CHANNELS * PATCH * PATCH    # 192
LN_EPS = 1e-12                          # HF ViT layer_norm_eps
ROWS = BATCH * SEQ                      # all tokens of all samples, one register slab
LABELS_PAD = 128                        # lane-dense logits slab width


def patchify(x, p):
    """NCHW -> (B, num_patches, C*p*p), patch flattened in (C, ph, pw) order
    to match PyTorch Conv2d(kernel=stride=patch) weight flattening."""
    B, C, H, W = x.shape
    gh, gw = H // p, W // p
    x = x.reshape(B, C, gh, p, gw, p)
    x = x.transpose(0, 2, 4, 1, 3, 5)           # (B, gh, gw, C, p, p)
    return x.reshape(B, gh * gw, C * p * p)


def _layernorm(y, g, b):
    mu = jnp.mean(y, axis=-1, keepdims=True)
    var = jnp.mean((y - mu) ** 2, axis=-1, keepdims=True)
    return (y - mu) * lax.rsqrt(var + LN_EPS) * g + b


# ------------------------------- Pallas kernel -------------------------------
# Row layout inside the kernel (consistent with the wrapper-built inputs):
#   rows [0, BATCH)                 : CLS token of sample b
#   rows [BATCH + b*N, BATCH+(b+1)N): patch tokens of sample b
# `mask_ref` is 0 for same-sample (row, col) pairs and -1e30 otherwise, so the
# single (ROWS, ROWS) attention is exactly per-sample attention.
def vit_kernel(patches_ref, addend_ref, mask_ref, pw_ref,
               ln1g_ref, ln1b_ref, wqkv_ref, bqkv_ref, wo_ref, bo_ref,
               ln2g_ref, ln2b_ref, wi_ref, bi_ref, wout_ref, bout_ref,
               lnfg_ref, lnfb_ref, poolw_ref, poolb_ref,
               clsw_ref, clsb_ref, out_ref):
    # ---- patch embedding for all samples at once; CLS + position emb + patch
    #      bias come in as the precomputed additive slab (CLS patch rows are 0). ----
    x = jnp.dot(patches_ref[...], pw_ref[...],
                preferred_element_type=jnp.float32) + addend_ref[...]   # (ROWS, H)

    mask = mask_ref[...]                                                # (ROWS, ROWS)
    scale = 1.0 / math.sqrt(HEAD_DIM)

    for l in range(NUM_LAYERS):
        # -------- multi-head self-attention (pre-LN), fused QKV --------
        h = _layernorm(x, ln1g_ref[l], ln1b_ref[l])
        qkv = jnp.dot(h, wqkv_ref[l],
                      preferred_element_type=jnp.float32) + bqkv_ref[l]  # (ROWS, 3H)

        ctx_proj = None
        wo_l = wo_ref[l]                                                 # (H, H)
        for hh in range(NUM_HEADS):
            lo, hi = hh * HEAD_DIM, (hh + 1) * HEAD_DIM
            qs = qkv[:, lo:hi]                                           # (ROWS, dh)
            ks = qkv[:, HIDDEN + lo:HIDDEN + hi]
            vs = qkv[:, 2 * HIDDEN + lo:2 * HIDDEN + hi]
            scores = lax.dot_general(qs, ks, (((1,), (1,)), ((), ())),
                                     preferred_element_type=jnp.float32) * scale
            probs = jax.nn.softmax(scores + mask, axis=-1)               # (ROWS, ROWS)
            ctx_h = jnp.dot(probs, vs, preferred_element_type=jnp.float32)
            # concat(heads) @ Wo  ==  sum_h ctx_h @ Wo[rows of head h]
            part = jnp.dot(ctx_h, wo_l[lo:hi, :],
                           preferred_element_type=jnp.float32)           # (ROWS, H)
            ctx_proj = part if ctx_proj is None else ctx_proj + part
        x = x + ctx_proj + bo_ref[l]                                     # residual

        # -------- MLP (pre-LN) --------
        # Only CLS rows are consumed after the encoder, so the LAST layer's MLP
        # runs on the (B, H) CLS slab only (attention above still sees all rows).
        y = x[0:BATCH, :] if l == NUM_LAYERS - 1 else x
        h2 = _layernorm(y, ln2g_ref[l], ln2b_ref[l])
        # TODO(synk): HF ViT uses exact erf-based GELU; tanh approximation used here.
        inter = jax.nn.gelu(
            jnp.dot(h2, wi_ref[l], preferred_element_type=jnp.float32) + bi_ref[l],
            approximate=True)
        x = y + jnp.dot(inter, wout_ref[l],
                        preferred_element_type=jnp.float32) + bout_ref[l]

    # ---- final LayerNorm (CLS rows only), pooler (dense -> tanh), classifier ----
    cls_tok = _layernorm(x, lnfg_ref[...], lnfb_ref[...])               # (B, H)
    pooled = jnp.tanh(jnp.dot(cls_tok, poolw_ref[...],
                              preferred_element_type=jnp.float32) + poolb_ref[...])
    # classifier weight/bias are zero-padded to LABELS_PAD -> lane-dense store
    out_ref[...] = jnp.dot(pooled, clsw_ref[...],
                           preferred_element_type=jnp.float32) + clsb_ref[...]


# ------------------------------- wrapper -------------------------------
def vit_forward_pallas(pixel_values, p):
    B = pixel_values.shape[0]
    patches = patchify(pixel_values, PATCH)                              # (B, N, PD)

    # ---- JAX-glue preprocessing: pure layout / parameter assembly (no model compute) ----
    # Tokens ordered as [all CLS rows, then all patch rows (b-major)].
    patches_aug = jnp.concatenate(
        [jnp.zeros((B, PATCH_DIM), jnp.float32),
         patches.reshape(B * NUM_PATCHES, PATCH_DIM)], axis=0)           # (ROWS, PD)
    cls_addend = jnp.broadcast_to(p['cls'] + p['pos'][0:1], (B, HIDDEN))
    patch_addend = jnp.tile(p['pos'][1:], (B, 1)) + p['patch_b']         # (B*N, H)
    addend = jnp.concatenate([cls_addend, patch_addend], axis=0)         # (ROWS, H)

    sample_id = jnp.concatenate(
        [jnp.arange(B), jnp.repeat(jnp.arange(B), NUM_PATCHES)])         # (ROWS,)
    mask = jnp.where(sample_id[:, None] == sample_id[None, :],
                     0.0, -1e30).astype(jnp.float32)                     # (ROWS, ROWS)

    cls_w_pad = jnp.zeros((HIDDEN, LABELS_PAD), jnp.float32).at[:, :NUM_LABELS].set(p['cls_w'])
    cls_b_pad = jnp.zeros((1, LABELS_PAD), jnp.float32).at[:, :NUM_LABELS].set(p['cls_b'])

    in_arrays = [patches_aug, addend, mask, p['patch_w'],
                 p['ln1_g'], p['ln1_b'], p['wqkv'], p['bqkv'], p['wo'], p['bo'],
                 p['ln2_g'], p['ln2_b'], p['wi'], p['bi'], p['wout'], p['bout'],
                 p['lnf_g'], p['lnf_b'], p['pool_w'], p['pool_b'],
                 cls_w_pad, cls_b_pad]

    def full_spec(a):
        n = a.ndim
        return pl.BlockSpec(a.shape, lambda i, _n=n: (0,) * _n)

    out = pl.pallas_call(
        vit_kernel,
        out_shape=jax.ShapeDtypeStruct((B, LABELS_PAD), jnp.float32),
        grid_spec=pltpu.PrefetchScalarGridSpec(
            num_scalar_prefetch=0,
            grid=(1,),                              # whole batch in one grid step
            in_specs=[full_spec(a) for a in in_arrays],
            out_specs=pl.BlockSpec((B, LABELS_PAD), lambda i: (0, 0))),
        compiler_params=pltpu.CompilerParams(dimension_semantics=("arbitrary",)),
    )(*in_arrays)
    return out[:, :NUM_LABELS]


# -------------------------- pure-JAX reference --------------------------
def vit_forward_reference(pixel_values, p):
    B = pixel_values.shape[0]
    patches = patchify(pixel_values, PATCH)
    emb = patches @ p['patch_w'] + p['patch_b']                          # (B, N, H)
    cls = jnp.broadcast_to(p['cls'][None], (B, 1, HIDDEN))
    x = jnp.concatenate([cls, emb], axis=1) + p['pos'][None]             # (B, S, H)
    scale = 1.0 / math.sqrt(HEAD_DIM)
    for l in range(NUM_LAYERS):
        h = _layernorm(x, p['ln1_g'][l], p['ln1_b'][l])
        qkv = h @ p['wqkv'][l] + p['bqkv'][l]
        q = qkv[..., :HIDDEN]
        k = qkv[..., HIDDEN:2 * HIDDEN]
        v = qkv[..., 2 * HIDDEN:]
        qh = q.reshape(B, SEQ, NUM_HEADS, HEAD_DIM)
        kh = k.reshape(B, SEQ, NUM_HEADS, HEAD_DIM)
        vh = v.reshape(B, SEQ, NUM_HEADS, HEAD_DIM)
        scores = jnp.einsum('bqnd,bknd->bnqk', qh, kh) * scale
        probs = jax.nn.softmax(scores, axis=-1)
        ctx = jnp.einsum('bnqk,bknd->bqnd', probs, vh).reshape(B, SEQ, HIDDEN)
        x = x + (ctx @ p['wo'][l] + p['bo'][l])
        h2 = _layernorm(x, p['ln2_g'][l], p['ln2_b'][l])
        inter = jax.nn.gelu(h2 @ p['wi'][l] + p['bi'][l], approximate=True)
        x = x + (inter @ p['wout'][l] + p['bout'][l])
    x = _layernorm(x, p['lnf_g'], p['lnf_b'])
    pooled = jnp.tanh(x[:, 0, :] @ p['pool_w'] + p['pool_b'])
    return pooled @ p['cls_w'] + p['cls_b']


# -------------------------- deterministic params --------------------------
def init_params(key):
    keys = iter(jax.random.split(key, 64))
    nrm = lambda shape, s=0.02: s * jax.random.normal(next(keys), shape, jnp.float32)
    L, H, I = NUM_LAYERS, HIDDEN, INTER
    # Conv2d patch-embedding weight, PyTorch layout (H_out, C, p, p), flattened for matmul.
    conv_w = nrm((H, CHANNELS, PATCH, PATCH))
    p = dict(
        patch_w=conv_w.reshape(H, PATCH_DIM).T,      # (PATCH_DIM, H)
        patch_b=nrm((1, H)),
        cls=nrm((1, H)),
        pos=nrm((SEQ, H)),
        ln1_g=jnp.ones((L, 1, H), jnp.float32),  ln1_b=jnp.zeros((L, 1, H), jnp.float32),
        wqkv=nrm((L, H, 3 * H)), bqkv=nrm((L, 1, 3 * H)),     # fused Q/K/V
        wo=nrm((L, H, H)), bo=nrm((L, 1, H)),
        ln2_g=jnp.ones((L, 1, H), jnp.float32),  ln2_b=jnp.zeros((L, 1, H), jnp.float32),
        wi=nrm((L, H, I)), bi=nrm((L, 1, I)),
        wout=nrm((L, I, H)), bout=nrm((L, 1, H)),
        lnf_g=jnp.ones((1, H), jnp.float32),     lnf_b=jnp.zeros((1, H), jnp.float32),
        pool_w=nrm((H, H)), pool_b=nrm((1, H)),
        cls_w=nrm((H, NUM_LABELS)), cls_b=nrm((1, NUM_LABELS)),
    )
    return p


if __name__ == "__main__":
    key = jax.random.PRNGKey(0)
    k_param, k_x = jax.random.split(key)
    params = init_params(k_param)
    pixel_values = jax.random.normal(k_x, (BATCH, CHANNELS, IMG, IMG), jnp.float32)

    logits = vit_forward_pallas(pixel_values, params)
    logits = jax.block_until_ready(logits)

    ref = vit_forward_reference(pixel_values, params)
    assert logits.shape == (BATCH, NUM_LABELS)
    assert jnp.allclose(logits, ref, atol=1e-4, rtol=1e-4), (logits, ref)
    print("KERNEL_OK")
</pallas_src>

<mosaic_0001>
module attributes {stable_mosaic.version = 11 : i64} {
  func.func @vit_kernel(%arg0: i32, %arg1: memref<10x192xf32, #tpu.memory_space<vmem>>, %arg2: memref<10x32xf32, #tpu.memory_space<vmem>>, %arg3: memref<10x10xf32, #tpu.memory_space<vmem>>, %arg4: memref<192x32xf32, #tpu.memory_space<vmem>>, %arg5: memref<2x1x32xf32, #tpu.memory_space<vmem>>, %arg6: memref<2x1x32xf32, #tpu.memory_space<vmem>>, %arg7: memref<2x32x96xf32, #tpu.memory_space<vmem>>, %arg8: memref<2x1x96xf32, #tpu.memory_space<vmem>>, %arg9: memref<2x32x32xf32, #tpu.memory_space<vmem>>, %arg10: memref<2x1x32xf32, #tpu.memory_space<vmem>>, %arg11: memref<2x1x32xf32, #tpu.memory_space<vmem>>, %arg12: memref<2x1x32xf32, #tpu.memory_space<vmem>>, %arg13: memref<2x32x128xf32, #tpu.memory_space<vmem>>, %arg14: memref<2x1x128xf32, #tpu.memory_space<vmem>>, %arg15: memref<2x128x32xf32, #tpu.memory_space<vmem>>, %arg16: memref<2x1x32xf32, #tpu.memory_space<vmem>>, %arg17: memref<1x32xf32, #tpu.memory_space<vmem>>, %arg18: memref<1x32xf32, #tpu.memory_space<vmem>>, %arg19: memref<32x32xf32, #tpu.memory_space<vmem>>, %arg20: memref<1x32xf32, #tpu.memory_space<vmem>>, %arg21: memref<32x128xf32, #tpu.memory_space<vmem>>, %arg22: memref<1x128xf32, #tpu.memory_space<vmem>>, %arg23: memref<2x128xf32, #tpu.memory_space<vmem>>) attributes {dimension_semantics = [#tpu.dimension_semantics<arbitrary>], iteration_bounds = array<i64: 1>, scalar_prefetch = 0 : i64, scratch_operands = 0 : i64, tpu.core_type = #tpu.core_type<tc>, window_params = [{pipeline_mode = #tpu.pipeline_mode<synchronous>, transform_indices = @transform_0, window_bounds = array<i64: 10, 192>}, {pipeline_mode = #tpu.pipeline_mode<synchronous>, transform_indices = @transform_1, window_bounds = array<i64: 10, 32>}, {pipeline_mode = #tpu.pipeline_mode<synchronous>, transform_indices = @transform_2, window_bounds = array<i64: 10, 10>}, {pipeline_mode = #tpu.pipeline_mode<synchronous>, transform_indices = @transform_3, window_bounds = array<i64: 192, 32>}, {pipeline_mode = #tpu.pipeline_mode<synchronous>, transform_indices = @transform_4, window_bounds = array<i64: 2, 1, 32>}, {pipeline_mode = #tpu.pipeline_mode<synchronous>, transform_indices = @transform_5, window_bounds = array<i64: 2, 1, 32>}, {pipeline_mode = #tpu.pipeline_mode<synchronous>, transform_indices = @transform_6, window_bounds = array<i64: 2, 32, 96>}, {pipeline_mode = #tpu.pipeline_mode<synchronous>, transform_indices = @transform_7, window_bounds = array<i64: 2, 1, 96>}, {pipeline_mode = #tpu.pipeline_mode<synchronous>, transform_indices = @transform_8, window_bounds = array<i64: 2, 32, 32>}, {pipeline_mode = #tpu.pipeline_mode<synchronous>, transform_indices = @transform_9, window_bounds = array<i64: 2, 1, 32>}, {pipeline_mode = #tpu.pipeline_mode<synchronous>, transform_indices = @transform_10, window_bounds = array<i64: 2, 1, 32>}, {pipeline_mode = #tpu.pipeline_mode<synchronous>, transform_indices = @transform_11, window_bounds = array<i64: 2, 1, 32>}, {pipeline_mode = #tpu.pipeline_mode<synchronous>, transform_indices = @transform_12, window_bounds = array<i64: 2, 32, 128>}, {pipeline_mode = #tpu.pipeline_mode<synchronous>, transform_indices = @transform_13, window_bounds = array<i64: 2, 1, 128>}, {pipeline_mode = #tpu.pipeline_mode<synchronous>, transform_indices = @transform_14, window_bounds = array<i64: 2, 128, 32>}, {pipeline_mode = #tpu.pipeline_mode<synchronous>, transform_indices = @transform_15, window_bounds = array<i64: 2, 1, 32>}, {pipeline_mode = #tpu.pipeline_mode<synchronous>, transform_indices = @transform_16, window_bounds = array<i64: 1, 32>}, {pipeline_mode = #tpu.pipeline_mode<synchronous>, transform_indices = @transform_17, window_bounds = array<i64: 1, 32>}, {pipeline_mode = #tpu.pipeline_mode<synchronous>, transform_indices = @transform_18, window_bounds = array<i64: 32, 32>}, {pipeline_mode = #tpu.pipeline_mode<synchronous>, transform_indices = @transform_19, window_bounds = array<i64: 1, 32>}, {pipeline_mode = #tpu.pipeline_mode<synchronous>, transform_indices = @transform_20, window_bounds = array<i64: 32, 128>}, {pipeline_mode = #tpu.pipeline_mode<synchronous>, transform_indices = @transform_21, window_bounds = array<i64: 1, 128>}, {pipeline_mode = #tpu.pipeline_mode<synchronous>, transform_indices = @transform_22, window_bounds = array<i64: 2, 128>}]} {
    %c0 = arith.constant 0 : index
    %c0_0 = arith.constant 0 : index
    %0 = vector.load %arg1[%c0, %c0_0] : memref<10x192xf32, #tpu.memory_space<vmem>>, vector<10x192xf32>
    %c0_1 = arith.constant 0 : index
    %c0_2 = arith.constant 0 : index
    %1 = vector.load %arg4[%c0_1, %c0_2] : memref<192x32xf32, #tpu.memory_space<vmem>>, vector<192x32xf32>
    %cst = arith.constant dense<0.000000e+00> : vector<10x32xf32>
    %2 = tpu.matmul %0, %1, %cst {dimension_numbers = #tpu.dot_dimension_numbers<[1], [0], [0], [1], [0, 0, 1, 1], [], []>} : vector<10x192xf32>, vector<192x32xf32>, vector<10x32xf32> -> vector<10x32xf32>
    %c0_3 = arith.constant 0 : index
    %c0_4 = arith.constant 0 : index
    %3 = vector.load %arg2[%c0_3, %c0_4] : memref<10x32xf32, #tpu.memory_space<vmem>>, vector<10x32xf32>
    %4 = arith.addf %2, %3 : vector<10x32xf32>
    %c0_5 = arith.constant 0 : index
    %c0_6 = arith.constant 0 : index
    %5 = vector.load %arg3[%c0_5, %c0_6] : memref<10x10xf32, #tpu.memory_space<vmem>>, vector<10x10xf32>
    %c0_7 = arith.constant 0 : index
    %c0_8 = arith.constant 0 : index
    %c0_9 = arith.constant 0 : index
    %6 = vector.load %arg5[%c0_7, %c0_8, %c0_9] : memref<2x1x32xf32, #tpu.memory_space<vmem>>, vector<1x1x32xf32>
    %7 = vector.shape_cast %6 : vector<1x1x32xf32> to vector<1x32xf32>
    %c0_10 = arith.constant 0 : index
    %c0_11 = arith.constant 0 : index
    %c0_12 = arith.constant 0 : index
    %8 = vector.load %arg6[%c0_10, %c0_11, %c0_12] : memref<2x1x32xf32, #tpu.memory_space<vmem>>, vector<1x1x32xf32>
    %9 = vector.shape_cast %8 : vector<1x1x32xf32> to vector<1x32xf32>
    %cst_13 = arith.constant dense<0.000000e+00> : vector<10xf32>
    %10 = vector.multi_reduction <add>, %4, %cst_13 [1] : vector<10x32xf32> to vector<10xf32>
    %11 = vector.shape_cast %10 : vector<10xf32> to vector<10x1xf32>
    %cst_14 = arith.constant 3.200000e+01 : f32
    %12 = vector.broadcast %cst_14 : f32 to vector<10x1xf32>
    %13 = arith.divf %11, %12 : vector<10x1xf32>
    %14 = vector.broadcast %13 : vector<10x1xf32> to vector<10x32xf32>
    %15 = arith.subf %4, %14 : vector<10x32xf32>
    %16 = arith.mulf %15, %15 : vector<10x32xf32>
    %cst_15 = arith.constant dense<0.000000e+00> : vector<10xf32>
    %17 = vector.multi_reduction <add>, %16, %cst_15 [1] : vector<10x32xf32> to vector<10xf32>
    %18 = vector.shape_cast %17 : vector<10xf32> to vector<10x1xf32>
    %cst_16 = arith.constant 3.200000e+01 : f32
    %19 = vector.broadcast %cst_16 : f32 to vector<10x1xf32>
    %20 = arith.divf %18, %19 : vector<10x1xf32>
    %21 = vector.broadcast %13 : vector<10x1xf32> to vector<10x32xf32>
    %22 = arith.subf %4, %21 : vector<10x32xf32>
    %cst_17 = arith.constant 9.99999996E-13 : f32
    %23 = vector.broadcast %cst_17 : f32 to vector<10x1xf32>
    %24 = arith.addf %20, %23 : vector<10x1xf32>
    %25 = math.rsqrt %24 : vector<10x1xf32>
    %26 = vector.broadcast %25 : vector<10x1xf32> to vector<10x32xf32>
    %27 = arith.mulf %22, %26 : vector<10x32xf32>
    %28 = vector.broadcast %7 : vector<1x32xf32> to vector<10x32xf32>
    %29 = arith.mulf %27, %28 : vector<10x32xf32>
    %30 = vector.broadcast %9 : vector<1x32xf32> to vector<10x32xf32>
    %31 = arith.addf %29, %30 : vector<10x32xf32>
    %c0_18 = arith.constant 0 : index
    %c0_19 = arith.constant 0 : index
    %c0_20 = arith.constant 0 : index
    %32 = vector.load %arg7[%c0_18, %c0_19, %c0_20] : memref<2x32x96xf32, #tpu.memory_space<vmem>>, vector<1x32x96xf32>
    %33 = vector.shape_cast %32 : vector<1x32x96xf32> to vector<32x96xf32>
    %cst_21 = arith.constant dense<0.000000e+00> : vector<10x96xf32>
    %34 = tpu.matmul %31, %33, %cst_21 {dimension_numbers = #tpu.dot_dimension_numbers<[1], [0], [0], [1], [0, 0, 1, 1], [], []>} : vector<10x32xf32>, vector<32x96xf32>, vector<10x96xf32> -> vector<10x96xf32>
    %c0_22 = arith.constant 0 : index
    %c0_23 = arith.constant 0 : index
    %c0_24 = arith.constant 0 : index
    %35 = vector.load %arg8[%c0_22, %c0_23, %c0_24] : memref<2x1x96xf32, #tpu.memory_space<vmem>>, vector<1x1x96xf32>
    %36 = vector.shape_cast %35 : vector<1x1x96xf32> to vector<1x96xf32>
    %37 = vector.broadcast %36 : vector<1x96xf32> to vector<10x96xf32>
    %38 = arith.addf %34, %37 : vector<10x96xf32>
    %c0_25 = arith.constant 0 : index
    %c0_26 = arith.constant 0 : index
    %c0_27 = arith.constant 0 : index
    %39 = vector.load %arg9[%c0_25, %c0_26, %c0_27] : memref<2x32x32xf32, #tpu.memory_space<vmem>>, vector<1x32x32xf32>
    %40 = vector.shape_cast %39 : vector<1x32x32xf32> to vector<32x32xf32>
    %41 = vector.extract_strided_slice %38 {offsets = [0, 0], sizes = [10, 16], strides = [1, 1]} : vector<10x96xf32> to vector<10x16xf32>
    %42 = vector.extract_strided_slice %38 {offsets = [0, 32], sizes = [10, 16], strides = [1, 1]} : vector<10x96xf32> to vector<10x16xf32>
    %43 = vector.extract_strided_slice %38 {offsets = [0, 64], sizes = [10, 16], strides = [1, 1]} : vector<10x96xf32> to vector<10x16xf32>
    %cst_28 = arith.constant dense<0.000000e+00> : vector<10x10xf32>
    %44 = tpu.matmul %41, %42, %cst_28 {dimension_numbers = #tpu.dot_dimension_numbers<[1], [1], [0], [0], [0, 0, 1, 0], [], []>} : vector<10x16xf32>, vector<10x16xf32>, vector<10x10xf32> -> vector<10x10xf32>
    %cst_29 = arith.constant 2.500000e-01 : f32
    %45 = vector.broadcast %cst_29 : f32 to vector<10x10xf32>
    %46 = arith.mulf %44, %45 : vector<10x10xf32>
    %47 = arith.addf %46, %5 : vector<10x10xf32>
    %cst_30 = arith.constant dense<0xFF800000> : vector<10xf32>
    %48 = vector.multi_reduction <maximumf>, %47, %cst_30 [1] : vector<10x10xf32> to vector<10xf32>
    %cst_31 = arith.constant 0xFF800000 : f32
    %49 = vector.broadcast %cst_31 : f32 to vector<10xf32>
    %50 = arith.maximumf %49, %48 : vector<10xf32>
    %51 = vector.shape_cast %50 : vector<10xf32> to vector<10x1xf32>
    %52 = vector.broadcast %51 : vector<10x1xf32> to vector<10x10xf32>
    %53 = arith.subf %47, %52 : vector<10x10xf32>
    %54 = math.exp %53 : vector<10x10xf32>
    %cst_32 = arith.constant dense<0.000000e+00> : vector<10xf32>
    %55 = vector.multi_reduction <add>, %54, %cst_32 [1] : vector<10x10xf32> to vector<10xf32>
    %56 = vector.shape_cast %55 : vector<10xf32> to vector<10x1xf32>
    %57 = vector.broadcast %56 : vector<10x1xf32> to vector<10x10xf32>
    %58 = arith.divf %54, %57 : vector<10x10xf32>
    %cst_33 = arith.constant dense<0.000000e+00> : vector<10x16xf32>
    %59 = tpu.matmul %58, %43, %cst_33 {dimension_numbers = #tpu.dot_dimension_numbers<[1], [0], [0], [1], [0, 0, 1, 1], [], []>} : vector<10x10xf32>, vector<10x16xf32>, vector<10x16xf32> -> vector<10x16xf32>
    %60 = vector.extract_strided_slice %40 {offsets = [0, 0], sizes = [16, 32], strides = [1, 1]} : vector<32x32xf32> to vector<16x32xf32>
    %cst_34 = arith.constant dense<0.000000e+00> : vector<10x32xf32>
    %61 = tpu.matmul %59, %60, %cst_34 {dimension_numbers = #tpu.dot_dimension_numbers<[1], [0], [0], [1], [0, 0, 1, 1], [], []>} : vector<10x16xf32>, vector<16x32xf32>, vector<10x32xf32> -> vector<10x32xf32>
    %62 = vector.extract_strided_slice %38 {offsets = [0, 16], sizes = [10, 16], strides = [1, 1]} : vector<10x96xf32> to vector<10x16xf32>
    %63 = vector.extract_strided_slice %38 {offsets = [0, 48], sizes = [10, 16], strides = [1, 1]} : vector<10x96xf32> to vector<10x16xf32>
    %64 = vector.extract_strided_slice %38 {offsets = [0, 80], sizes = [10, 16], strides = [1, 1]} : vector<10x96xf32> to vector<10x16xf32>
    %cst_35 = arith.constant dense<0.000000e+00> : vector<10x10xf32>
    %65 = tpu.matmul %62, %63, %cst_35 {dimension_numbers = #tpu.dot_dimension_numbers<[1], [1], [0], [0], [0, 0, 1, 0], [], []>} : vector<10x16xf32>, vector<10x16xf32>, vector<10x10xf32> -> vector<10x10xf32>
    %cst_36 = arith.constant 2.500000e-01 : f32
    %66 = vector.broadcast %cst_36 : f32 to vector<10x10xf32>
    %67 = arith.mulf %65, %66 : vector<10x10xf32>
    %68 = arith.addf %67, %5 : vector<10x10xf32>
    %cst_37 = arith.constant dense<0xFF800000> : vector<10xf32>
    %69 = vector.multi_reduction <maximumf>, %68, %cst_37 [1] : vector<10x10xf32> to vector<10xf32>
    %cst_38 = arith.constant 0xFF800000 : f32
    %70 = vector.broadcast %cst_38 : f32 to vector<10xf32>
    %71 = arith.maximumf %70, %69 : vector<10xf32>
    %72 = vector.shape_cast %71 : vector<10xf32> to vector<10x1xf32>
    %73 = vector.broadcast %72 : vector<10x1xf32> to vector<10x10xf32>
    %74 = arith.subf %68, %73 : vector<10x10xf32>
    %75 = math.exp %74 : vector<10x10xf32>
    %cst_39 = arith.constant dense<0.000000e+00> : vector<10xf32>
    %76 = vector.multi_reduction <add>, %75, %cst_39 [1] : vector<10x10xf32> to vector<10xf32>
    %77 = vector.shape_cast %76 : vector<10xf32> to vector<10x1xf32>
    %78 = vector.broadcast %77 : vector<10x1xf32> to vector<10x10xf32>
    %79 = arith.divf %75, %78 : vector<10x10xf32>
    %cst_40 = arith.constant dense<0.000000e+00> : vector<10x16xf32>
    %80 = tpu.matmul %79, %64, %cst_40 {dimension_numbers = #tpu.dot_dimension_numbers<[1], [0], [0], [1], [0, 0, 1, 1], [], []>} : vector<10x10xf32>, vector<10x16xf32>, vector<10x16xf32> -> vector<10x16xf32>
    %81 = vector.extract_strided_slice %40 {offsets = [16, 0], sizes = [16, 32], strides = [1, 1]} : vector<32x32xf32> to vector<16x32xf32>
    %cst_41 = arith.constant dense<0.000000e+00> : vector<10x32xf32>
    %82 = tpu.matmul %80, %81, %cst_41 {dimension_numbers = #tpu.dot_dimension_numbers<[1], [0], [0], [1], [0, 0, 1, 1], [], []>} : vector<10x16xf32>, vector<16x32xf32>, vector<10x32xf32> -> vector<10x32xf32>
    %83 = arith.addf %61, %82 : vector<10x32xf32>
    %84 = arith.addf %4, %83 : vector<10x32xf32>
    %c0_42 = arith.constant 0 : index
    %c0_43 = arith.constant 0 : index
    %c0_44 = arith.constant 0 : index
    %85 = vector.load %arg10[%c0_42, %c0_43, %c0_44] : memref<2x1x32xf32, #tpu.memory_space<vmem>>, vector<1x1x32xf32>
    %86 = vector.shape_cast %85 : vector<1x1x32xf32> to vector<1x32xf32>
    %87 = vector.broadcast %86 : vector<1x32xf32> to vector<10x32xf32>
    %88 = arith.addf %84, %87 : vector<10x32xf32>
    %c0_45 = arith.constant 0 : index
    %c0_46 = arith.constant 0 : index
    %c0_47 = arith.constant 0 : index
    %89 = vector.load %arg11[%c0_45, %c0_46, %c0_47] : memref<2x1x32xf32, #tpu.memory_space<vmem>>, vector<1x1x32xf32>
    %90 = vector.shape_cast %89 : vector<1x1x32xf32> to vector<1x32xf32>
    %c0_48 = arith.constant 0 : index
    %c0_49 = arith.constant 0 : index
    %c0_50 = arith.constant 0 : index
    %91 = vector.load %arg12[%c0_48, %c0_49, %c0_50] : memref<2x1x32xf32, #tpu.memory_space<vmem>>, vector<1x1x32xf32>
    %92 = vector.shape_cast %91 : vector<1x1x32xf32> to vector<1x32xf32>
    %cst_51 = arith.constant dense<0.000000e+00> : vector<10xf32>
    %93 = vector.multi_reduction <add>, %88, %cst_51 [1] : vector<10x32xf32> to vector<10xf32>
    %94 = vector.shape_cast %93 : vector<10xf32> to vector<10x1xf32>
    %cst_52 = arith.constant 3.200000e+01 : f32
    %95 = vector.broadcast %cst_52 : f32 to vector<10x1xf32>
    %96 = arith.divf %94, %95 : vector<10x1xf32>
    %97 = vector.broadcast %96 : vector<10x1xf32> to vector<10x32xf32>
    %98 = arith.subf %88, %97 : vector<10x32xf32>
    %99 = arith.mulf %98, %98 : vector<10x32xf32>
    %cst_53 = arith.constant dense<0.000000e+00> : vector<10xf32>
    %100 = vector.multi_reduction <add>, %99, %cst_53 [1] : vector<10x32xf32> to vector<10xf32>
    %101 = vector.shape_cast %100 : vector<10xf32> to vector<10x1xf32>
    %cst_54 = arith.constant 3.200000e+01 : f32
    %102 = vector.broadcast %cst_54 : f32 to vector<10x1xf32>
    %103 = arith.divf %101, %102 : vector<10x1xf32>
    %104 = vector.broadcast %96 : vector<10x1xf32> to vector<10x32xf32>
    %105 = arith.subf %88, %104 : vector<10x32xf32>
    %cst_55 = arith.constant 9.99999996E-13 : f32
    %106 = vector.broadcast %cst_55 : f32 to vector<10x1xf32>
    %107 = arith.addf %103, %106 : vector<10x1xf32>
    %108 = math.rsqrt %107 : vector<10x1xf32>
    %109 = vector.broadcast %108 : vector<10x1xf32> to vector<10x32xf32>
    %110 = arith.mulf %105, %109 : vector<10x32xf32>
    %111 = vector.broadcast %90 : vector<1x32xf32> to vector<10x32xf32>
    %112 = arith.mulf %110, %111 : vector<10x32xf32>
    %113 = vector.broadcast %92 : vector<1x32xf32> to vector<10x32xf32>
    %114 = arith.addf %112, %113 : vector<10x32xf32>
    %c0_56 = arith.constant 0 : index
    %c0_57 = arith.constant 0 : index
    %c0_58 = arith.constant 0 : index
    %115 = vector.load %arg13[%c0_56, %c0_57, %c0_58] : memref<2x32x128xf32, #tpu.memory_space<vmem>>, vector<1x32x128xf32>
    %116 = vector.shape_cast %115 : vector<1x32x128xf32> to vector<32x128xf32>
    %cst_59 = arith.constant dense<0.000000e+00> : vector<10x128xf32>
    %117 = tpu.matmul %114, %116, %cst_59 {dimension_numbers = #tpu.dot_dimension_numbers<[1], [0], [0], [1], [0, 0, 1, 1], [], []>} : vector<10x32xf32>, vector<32x128xf32>, vector<10x128xf32> -> vector<10x128xf32>
    %c0_60 = arith.constant 0 : index
    %c0_61 = arith.constant 0 : index
    %c0_62 = arith.constant 0 : index
    %118 = vector.load %arg14[%c0_60, %c0_61, %c0_62] : memref<2x1x128xf32, #tpu.memory_space<vmem>>, vector<1x1x128xf32>
    %119 = vector.shape_cast %118 : vector<1x1x128xf32> to vector<1x128xf32>
    %120 = vector.broadcast %119 : vector<1x128xf32> to vector<10x128xf32>
    %121 = arith.addf %117, %120 : vector<10x128xf32>
    %122 = arith.mulf %121, %121 : vector<10x128xf32>
    %123 = arith.mulf %121, %122 : vector<10x128xf32>
    %cst_63 = arith.constant 4.471500e-02 : f32
    %124 = vector.broadcast %cst_63 : f32 to vector<10x128xf32>
    %125 = arith.mulf %124, %123 : vector<10x128xf32>
    %126 = arith.addf %121, %125 : vector<10x128xf32>
    %cst_64 = arith.constant 0.797884583 : f32
    %127 = vector.broadcast %cst_64 : f32 to vector<10x128xf32>
    %128 = arith.mulf %127, %126 : vector<10x128xf32>
    %129 = math.tanh %128 : vector<10x128xf32>
    %cst_65 = arith.constant 1.000000e+00 : f32
    %130 = vector.broadcast %cst_65 : f32 to vector<10x128xf32>
    %131 = arith.addf %130, %129 : vector<10x128xf32>
    %cst_66 = arith.constant 5.000000e-01 : f32
    %132 = vector.broadcast %cst_66 : f32 to vector<10x128xf32>
    %133 = arith.mulf %132, %131 : vector<10x128xf32>
    %134 = arith.mulf %121, %133 : vector<10x128xf32>
    %c0_67 = arith.constant 0 : index
    %c0_68 = arith.constant 0 : index
    %c0_69 = arith.constant 0 : index
    %135 = vector.load %arg15[%c0_67, %c0_68, %c0_69] : memref<2x128x32xf32, #tpu.memory_space<vmem>>, vector<1x128x32xf32>
    %136 = vector.shape_cast %135 : vector<1x128x32xf32> to vector<128x32xf32>
    %cst_70 = arith.constant dense<0.000000e+00> : vector<10x32xf32>
    %137 = tpu.matmul %134, %136, %cst_70 {dimension_numbers = #tpu.dot_dimension_numbers<[1], [0], [0], [1], [0, 0, 1, 1], [], []>} : vector<10x128xf32>, vector<128x32xf32>, vector<10x32xf32> -> vector<10x32xf32>
    %138 = arith.addf %88, %137 : vector<10x32xf32>
    %c0_71 = arith.constant 0 : index
    %c0_72 = arith.constant 0 : index
    %c0_73 = arith.constant 0 : index
    %139 = vector.load %arg16[%c0_71, %c0_72, %c0_73] : memref<2x1x32xf32, #tpu.memory_space<vmem>>, vector<1x1x32xf32>
    %140 = vector.shape_cast %139 : vector<1x1x32xf32> to vector<1x32xf32>
    %141 = vector.broadcast %140 : vector<1x32xf32> to vector<10x32xf32>
    %142 = arith.addf %138, %141 : vector<10x32xf32>
    %c1 = arith.constant 1 : index
    %c0_74 = arith.constant 0 : index
    %c0_75 = arith.constant 0 : index
    %143 = vector.load %arg5[%c1, %c0_74, %c0_75] : memref<2x1x32xf32, #tpu.memory_space<vmem>>, vector<1x1x32xf32>
    %144 = vector.shape_cast %143 : vector<1x1x32xf32> to vector<1x32xf32>
    %c1_76 = arith.constant 1 : index
    %c0_77 = arith.constant 0 : index
    %c0_78 = arith.constant 0 : index
    %145 = vector.load %arg6[%c1_76, %c0_77, %c0_78] : memref<2x1x32xf32, #tpu.memory_space<vmem>>, vector<1x1x32xf32>
    %146 = vector.shape_cast %145 : vector<1x1x32xf32> to vector<1x32xf32>
    %cst_79 = arith.constant dense<0.000000e+00> : vector<10xf32>
    %147 = vector.multi_reduction <add>, %142, %cst_79 [1] : vector<10x32xf32> to vector<10xf32>
    %148 = vector.shape_cast %147 : vector<10xf32> to vector<10x1xf32>
    %cst_80 = arith.constant 3.200000e+01 : f32
    %149 = vector.broadcast %cst_80 : f32 to vector<10x1xf32>
    %150 = arith.divf %148, %149 : vector<10x1xf32>
    %151 = vector.broadcast %150 : vector<10x1xf32> to vector<10x32xf32>
    %152 = arith.subf %142, %151 : vector<10x32xf32>
    %153 = arith.mulf %152, %152 : vector<10x32xf32>
    %cst_81 = arith.constant dense<0.000000e+00> : vector<10xf32>
    %154 = vector.multi_reduction <add>, %153, %cst_81 [1] : vector<10x32xf32> to vector<10xf32>
    %155 = vector.shape_cast %154 : vector<10xf32> to vector<10x1xf32>
    %cst_82 = arith.constant 3.200000e+01 : f32
    %156 = vector.broadcast %cst_82 : f32 to vector<10x1xf32>
    %157 = arith.divf %155, %156 : vector<10x1xf32>
    %158 = vector.broadcast %150 : vector<10x1xf32> to vector<10x32xf32>
    %159 = arith.subf %142, %158 : vector<10x32xf32>
    %cst_83 = arith.constant 9.99999996E-13 : f32
    %160 = vector.broadcast %cst_83 : f32 to vector<10x1xf32>
    %161 = arith.addf %157, %160 : vector<10x1xf32>
    %162 = math.rsqrt %161 : vector<10x1xf32>
    %163 = vector.broadcast %162 : vector<10x1xf32> to vector<10x32xf32>
    %164 = arith.mulf %159, %163 : vector<10x32xf32>
    %165 = vector.broadcast %144 : vector<1x32xf32> to vector<10x32xf32>
    %166 = arith.mulf %164, %165 : vector<10x32xf32>
    %167 = vector.broadcast %146 : vector<1x32xf32> to vector<10x32xf32>
    %168 = arith.addf %166, %167 : vector<10x32xf32>
    %c1_84 = arith.constant 1 : index
    %c0_85 = arith.constant 0 : index
    %c0_86 = arith.constant 0 : index
    %169 = vector.load %arg7[%c1_84, %c0_85, %c0_86] : memref<2x32x96xf32, #tpu.memory_space<vmem>>, vector<1x32x96xf32>
    %170 = vector.shape_cast %169 : vector<1x32x96xf32> to vector<32x96xf32>
    %cst_87 = arith.constant dense<0.000000e+00> : vector<10x96xf32>
    %171 = tpu.matmul %168, %170, %cst_87 {dimension_numbers = #tpu.dot_dimension_numbers<[1], [0], [0], [1], [0, 0, 1, 1], [], []>} : vector<10x32xf32>, vector<32x96xf32>, vector<10x96xf32> -> vector<10x96xf32>
    %c1_88 = arith.constant 1 : index
    %c0_89 = arith.constant 0 : index
    %c0_90 = arith.constant 0 : index
    %172 = vector.load %arg8[%c1_88, %c0_89, %c0_90] : memref<2x1x96xf32, #tpu.memory_space<vmem>>, vector<1x1x96xf32>
    %173 = vector.shape_cast %172 : vector<1x1x96xf32> to vector<1x96xf32>
    %174 = vector.broadcast %173 : vector<1x96xf32> to vector<10x96xf32>
    %175 = arith.addf %171, %174 : vector<10x96xf32>
    %c1_91 = arith.constant 1 : index
    %c0_92 = arith.constant 0 : index
    %c0_93 = arith.constant 0 : index
    %176 = vector.load %arg9[%c1_91, %c0_92, %c0_93] : memref<2x32x32xf32, #tpu.memory_space<vmem>>, vector<1x32x32xf32>
    %177 = vector.shape_cast %176 : vector<1x32x32xf32> to vector<32x32xf32>
    %178 = vector.extract_strided_slice %175 {offsets = [0, 0], sizes = [10, 16], strides = [1, 1]} : vector<10x96xf32> to vector<10x16xf32>
    %179 = vector.extract_strided_slice %175 {offsets = [0, 32], sizes = [10, 16], strides = [1, 1]} : vector<10x96xf32> to vector<10x16xf32>
    %180 = vector.extract_strided_slice %175 {offsets = [0, 64], sizes = [10, 16], strides = [1, 1]} : vector<10x96xf32> to vector<10x16xf32>
    %cst_94 = arith.constant dense<0.000000e+00> : vector<10x10xf32>
    %181 = tpu.matmul %178, %179, %cst_94 {dimension_numbers = #tpu.dot_dimension_numbers<[1], [1], [0], [0], [0, 0, 1, 0], [], []>} : vector<10x16xf32>, vector<10x16xf32>, vector<10x10xf32> -> vector<10x10xf32>
    %cst_95 = arith.constant 2.500000e-01 : f32
    %182 = vector.broadcast %cst_95 : f32 to vector<10x10xf32>
    %183 = arith.mulf %181, %182 : vector<10x10xf32>
    %184 = arith.addf %183, %5 : vector<10x10xf32>
    %cst_96 = arith.constant dense<0xFF800000> : vector<10xf32>
    %185 = vector.multi_reduction <maximumf>, %184, %cst_96 [1] : vector<10x10xf32> to vector<10xf32>
    %cst_97 = arith.constant 0xFF800000 : f32
    %186 = vector.broadcast %cst_97 : f32 to vector<10xf32>
    %187 = arith.maximumf %186, %185 : vector<10xf32>
    %188 = vector.shape_cast %187 : vector<10xf32> to vector<10x1xf32>
    %189 = vector.broadcast %188 : vector<10x1xf32> to vector<10x10xf32>
    %190 = arith.subf %184, %189 : vector<10x10xf32>
    %191 = math.exp %190 : vector<10x10xf32>
    %cst_98 = arith.constant dense<0.000000e+00> : vector<10xf32>
    %192 = vector.multi_reduction <add>, %191, %cst_98 [1] : vector<10x10xf32> to vector<10xf32>
    %193 = vector.shape_cast %192 : vector<10xf32> to vector<10x1xf32>
    %194 = vector.broadcast %193 : vector<10x1xf32> to vector<10x10xf32>
    %195 = arith.divf %191, %194 : vector<10x10xf32>
    %cst_99 = arith.constant dense<0.000000e+00> : vector<10x16xf32>
    %196 = tpu.matmul %195, %180, %cst_99 {dimension_numbers = #tpu.dot_dimension_numbers<[1], [0], [0], [1], [0, 0, 1, 1], [], []>} : vector<10x10xf32>, vector<10x16xf32>, vector<10x16xf32> -> vector<10x16xf32>
    %197 = vector.extract_strided_slice %177 {offsets = [0, 0], sizes = [16, 32], strides = [1, 1]} : vector<32x32xf32> to vector<16x32xf32>
    %cst_100 = arith.constant dense<0.000000e+00> : vector<10x32xf32>
    %198 = tpu.matmul %196, %197, %cst_100 {dimension_numbers = #tpu.dot_dimension_numbers<[1], [0], [0], [1], [0, 0, 1, 1], [], []>} : vector<10x16xf32>, vector<16x32xf32>, vector<10x32xf32> -> vector<10x32xf32>
    %199 = vector.extract_strided_slice %175 {offsets = [0, 16], sizes = [10, 16], strides = [1, 1]} : vector<10x96xf32> to vector<10x16xf32>
    %200 = vector.extract_strided_slice %175 {offsets = [0, 48], sizes = [10, 16], strides = [1, 1]} : vector<10x96xf32> to vector<10x16xf32>
    %201 = vector.extract_strided_slice %175 {offsets = [0, 80], sizes = [10, 16], strides = [1, 1]} : vector<10x96xf32> to vector<10x16xf32>
    %cst_101 = arith.constant dense<0.000000e+00> : vector<10x10xf32>
    %202 = tpu.matmul %199, %200, %cst_101 {dimension_numbers = #tpu.dot_dimension_numbers<[1], [1], [0], [0], [0, 0, 1, 0], [], []>} : vector<10x16xf32>, vector<10x16xf32>, vector<10x10xf32> -> vector<10x10xf32>
    %cst_102 = arith.constant 2.500000e-01 : f32
    %203 = vector.broadcast %cst_102 : f32 to vector<10x10xf32>
    %204 = arith.mulf %202, %203 : vector<10x10xf32>
    %205 = arith.addf %204, %5 : vector<10x10xf32>
    %cst_103 = arith.constant dense<0xFF800000> : vector<10xf32>
    %206 = vector.multi_reduction <maximumf>, %205, %cst_103 [1] : vector<10x10xf32> to vector<10xf32>
    %cst_104 = arith.constant 0xFF800000 : f32
    %207 = vector.broadcast %cst_104 : f32 to vector<10xf32>
    %208 = arith.maximumf %207, %206 : vector<10xf32>
    %209 = vector.shape_cast %208 : vector<10xf32> to vector<10x1xf32>
    %210 = vector.broadcast %209 : vector<10x1xf32> to vector<10x10xf32>
    %211 = arith.subf %205, %210 : vector<10x10xf32>
    %212 = math.exp %211 : vector<10x10xf32>
    %cst_105 = arith.constant dense<0.000000e+00> : vector<10xf32>
    %213 = vector.multi_reduction <add>, %212, %cst_105 [1] : vector<10x10xf32> to vector<10xf32>
    %214 = vector.shape_cast %213 : vector<10xf32> to vector<10x1xf32>
    %215 = vector.broadcast %214 : vector<10x1xf32> to vector<10x10xf32>
    %216 = arith.divf %212, %215 : vector<10x10xf32>
    %cst_106 = arith.constant dense<0.000000e+00> : vector<10x16xf32>
    %217 = tpu.matmul %216, %201, %cst_106 {dimension_numbers = #tpu.dot_dimension_numbers<[1], [0], [0], [1], [0, 0, 1, 1], [], []>} : vector<10x10xf32>, vector<10x16xf32>, vector<10x16xf32> -> vector<10x16xf32>
    %218 = vector.extract_strided_slice %177 {offsets = [16, 0], sizes = [16, 32], strides = [1, 1]} : vector<32x32xf32> to vector<16x32xf32>
    %cst_107 = arith.constant dense<0.000000e+00> : vector<10x32xf32>
    %219 = tpu.matmul %217, %218, %cst_107 {dimension_numbers = #tpu.dot_dimension_numbers<[1], [0], [0], [1], [0, 0, 1, 1], [], []>} : vector<10x16xf32>, vector<16x32xf32>, vector<10x32xf32> -> vector<10x32xf32>
    %220 = arith.addf %198, %219 : vector<10x32xf32>
    %221 = arith.addf %142, %220 : vector<10x32xf32>
    %c1_108 = arith.constant 1 : index
    %c0_109 = arith.constant 0 : index
    %c0_110 = arith.constant 0 : index
    %222 = vector.load %arg10[%c1_108, %c0_109, %c0_110] : memref<2x1x32xf32, #tpu.memory_space<vmem>>, vector<1x1x32xf32>
    %223 = vector.shape_cast %222 : vector<1x1x32xf32> to vector<1x32xf32>
    %224 = vector.broadcast %223 : vector<1x32xf32> to vector<10x32xf32>
    %225 = arith.addf %221, %224 : vector<10x32xf32>
    %226 = vector.extract_strided_slice %225 {offsets = [0, 0], sizes = [2, 32], strides = [1, 1]} : vector<10x32xf32> to vector<2x32xf32>
    %c1_111 = arith.constant 1 : index
    %c0_112 = arith.constant 0 : index
    %c0_113 = arith.constant 0 : index
    %227 = vector.load %arg11[%c1_111, %c0_112, %c0_113] : memref<2x1x32xf32, #tpu.memory_space<vmem>>, vector<1x1x32xf32>
    %228 = vector.shape_cast %227 : vector<1x1x32xf32> to vector<1x32xf32>
    %c1_114 = arith.constant 1 : index
    %c0_115 = arith.constant 0 : index
    %c0_116 = arith.constant 0 : index
    %229 = vector.load %arg12[%c1_114, %c0_115, %c0_116] : memref<2x1x32xf32, #tpu.memory_space<vmem>>, vector<1x1x32xf32>
    %230 = vector.shape_cast %229 : vector<1x1x32xf32> to vector<1x32xf32>
    %cst_117 = arith.constant dense<0.000000e+00> : vector<2xf32>
    %231 = vector.multi_reduction <add>, %226, %cst_117 [1] : vector<2x32xf32> to vector<2xf32>
    %232 = vector.shape_cast %231 : vector<2xf32> to vector<2x1xf32>
    %cst_118 = arith.constant 3.200000e+01 : f32
    %233 = vector.broadcast %cst_118 : f32 to vector<2x1xf32>
    %234 = arith.divf %232, %233 : vector<2x1xf32>
    %235 = vector.broadcast %234 : vector<2x1xf32> to vector<2x32xf32>
    %236 = arith.subf %226, %235 : vector<2x32xf32>
    %237 = arith.mulf %236, %236 : vector<2x32xf32>
    %cst_119 = arith.constant dense<0.000000e+00> : vector<2xf32>
    %238 = vector.multi_reduction <add>, %237, %cst_119 [1] : vector<2x32xf32> to vector<2xf32>
    %239 = vector.shape_cast %238 : vector<2xf32> to vector<2x1xf32>
    %cst_120 = arith.constant 3.200000e+01 : f32
    %240 = vector.broadcast %cst_120 : f32 to vector<2x1xf32>
    %241 = arith.divf %239, %240 : vector<2x1xf32>
    %242 = vector.broadcast %234 : vector<2x1xf32> to vector<2x32xf32>
    %243 = arith.subf %226, %242 : vector<2x32xf32>
    %cst_121 = arith.constant 9.99999996E-13 : f32
    %244 = vector.broadcast %cst_121 : f32 to vector<2x1xf32>
    %245 = arith.addf %241, %244 : vector<2x1xf32>
    %246 = math.rsqrt %245 : vector<2x1xf32>
    %247 = vector.broadcast %246 : vector<2x1xf32> to vector<2x32xf32>
    %248 = arith.mulf %243, %247 : vector<2x32xf32>
    %249 = vector.broadcast %228 : vector<1x32xf32> to vector<2x32xf32>
    %250 = arith.mulf %248, %249 : vector<2x32xf32>
    %251 = vector.broadcast %230 : vector<1x32xf32> to vector<2x32xf32>
    %252 = arith.addf %250, %251 : vector<2x32xf32>
    %c1_122 = arith.constant 1 : index
    %c0_123 = arith.constant 0 : index
    %c0_124 = arith.constant 0 : index
    %253 = vector.load %arg13[%c1_122, %c0_123, %c0_124] : memref<2x32x128xf32, #tpu.memory_space<vmem>>, vector<1x32x128xf32>
    %254 = vector.shape_cast %253 : vector<1x32x128xf32> to vector<32x128xf32>
    %cst_125 = arith.constant dense<0.000000e+00> : vector<2x128xf32>
    %255 = tpu.matmul %252, %254, %cst_125 {dimension_numbers = #tpu.dot_dimension_numbers<[1], [0], [0], [1], [0, 0, 1, 1], [], []>} : vector<2x32xf32>, vector<32x128xf32>, vector<2x128xf32> -> vector<2x128xf32>
    %c1_126 = arith.constant 1 : index
    %c0_127 = arith.constant 0 : index
    %c0_128 = arith.constant 0 : index
    %256 = vector.load %arg14[%c1_126, %c0_127, %c0_128] : memref<2x1x128xf32, #tpu.memory_space<vmem>>, vector<1x1x128xf32>
    %257 = vector.shape_cast %256 : vector<1x1x128xf32> to vector<1x128xf32>
    %258 = vector.broadcast %257 : vector<1x128xf32> to vector<2x128xf32>
    %259 = arith.addf %255, %258 : vector<2x128xf32>
    %260 = arith.mulf %259, %259 : vector<2x128xf32>
    %261 = arith.mulf %259, %260 : vector<2x128xf32>
    %cst_129 = arith.constant 4.471500e-02 : f32
    %262 = vector.broadcast %cst_129 : f32 to vector<2x128xf32>
    %263 = arith.mulf %262, %261 : vector<2x128xf32>
    %264 = arith.addf %259, %263 : vector<2x128xf32>
    %cst_130 = arith.constant 0.797884583 : f32
    %265 = vector.broadcast %cst_130 : f32 to vector<2x128xf32>
    %266 = arith.mulf %265, %264 : vector<2x128xf32>
    %267 = math.tanh %266 : vector<2x128xf32>
    %cst_131 = arith.constant 1.000000e+00 : f32
    %268 = vector.broadcast %cst_131 : f32 to vector<2x128xf32>
    %269 = arith.addf %268, %267 : vector<2x128xf32>
    %cst_132 = arith.constant 5.000000e-01 : f32
    %270 = vector.broadcast %cst_132 : f32 to vector<2x128xf32>
    %271 = arith.mulf %270, %269 : vector<2x128xf32>
    %272 = arith.mulf %259, %271 : vector<2x128xf32>
    %c1_133 = arith.constant 1 : index
    %c0_134 = arith.constant 0 : index
    %c0_135 = arith.constant 0 : index
    %273 = vector.load %arg15[%c1_133, %c0_134, %c0_135] : memref<2x128x32xf32, #tpu.memory_space<vmem>>, vector<1x128x32xf32>
    %274 = vector.shape_cast %273 : vector<1x128x32xf32> to vector<128x32xf32>
    %cst_136 = arith.constant dense<0.000000e+00> : vector<2x32xf32>
    %275 = tpu.matmul %272, %274, %cst_136 {dimension_numbers = #tpu.dot_dimension_numbers<[1], [0], [0], [1], [0, 0, 1, 1], [], []>} : vector<2x128xf32>, vector<128x32xf32>, vector<2x32xf32> -> vector<2x32xf32>
    %276 = arith.addf %226, %275 : vector<2x32xf32>
    %c1_137 = arith.constant 1 : index
    %c0_138 = arith.constant 0 : index
    %c0_139 = arith.constant 0 : index
    %277 = vector.load %arg16[%c1_137, %c0_138, %c0_139] : memref<2x1x32xf32, #tpu.memory_space<vmem>>, vector<1x1x32xf32>
    %278 = vector.shape_cast %277 : vector<1x1x32xf32> to vector<1x32xf32>
    %279 = vector.broadcast %278 : vector<1x32xf32> to vector<2x32xf32>
    %280 = arith.addf %276, %279 : vector<2x32xf32>
    %c0_140 = arith.constant 0 : index
    %c0_141 = arith.constant 0 : index
    %281 = vector.load %arg17[%c0_140, %c0_141] : memref<1x32xf32, #tpu.memory_space<vmem>>, vector<1x32xf32>
    %c0_142 = arith.constant 0 : index
    %c0_143 = arith.constant 0 : index
    %282 = vector.load %arg18[%c0_142, %c0_143] : memref<1x32xf32, #tpu.memory_space<vmem>>, vector<1x32xf32>
    %cst_144 = arith.constant dense<0.000000e+00> : vector<2xf32>
    %283 = vector.multi_reduction <add>, %280, %cst_144 [1] : vector<2x32xf32> to vector<2xf32>
    %284 = vector.shape_cast %283 : vector<2xf32> to vector<2x1xf32>
    %cst_145 = arith.constant 3.200000e+01 : f32
    %285 = vector.broadcast %cst_145 : f32 to vector<2x1xf32>
    %286 = arith.divf %284, %285 : vector<2x1xf32>
    %287 = vector.broadcast %286 : vector<2x1xf32> to vector<2x32xf32>
    %288 = arith.subf %280, %287 : vector<2x32xf32>
    %289 = arith.mulf %288, %288 : vector<2x32xf32>
    %cst_146 = arith.constant dense<0.000000e+00> : vector<2xf32>
    %290 = vector.multi_reduction <add>, %289, %cst_146 [1] : vector<2x32xf32> to vector<2xf32>
    %291 = vector.shape_cast %290 : vector<2xf32> to vector<2x1xf32>
    %cst_147 = arith.constant 3.200000e+01 : f32
    %292 = vector.broadcast %cst_147 : f32 to vector<2x1xf32>
    %293 = arith.divf %291, %292 : vector<2x1xf32>
    %294 = vector.broadcast %286 : vector<2x1xf32> to vector<2x32xf32>
    %295 = arith.subf %280, %294 : vector<2x32xf32>
    %cst_148 = arith.constant 9.99999996E-13 : f32
    %296 = vector.broadcast %cst_148 : f32 to vector<2x1xf32>
    %297 = arith.addf %293, %296 : vector<2x1xf32>
    %298 = math.rsqrt %297 : vector<2x1xf32>
    %299 = vector.broadcast %298 : vector<2x1xf32> to vector<2x32xf32>
    %300 = arith.mulf %295, %299 : vector<2x32xf32>
    %301 = vector.broadcast %281 : vector<1x32xf32> to vector<2x32xf32>
    %302 = arith.mulf %300, %301 : vector<2x32xf32>
    %303 = vector.broadcast %282 : vector<1x32xf32> to vector<2x32xf32>
    %304 = arith.addf %302, %303 : vector<2x32xf32>
    %c0_149 = arith.constant 0 : index
    %c0_150 = arith.constant 0 : index
    %305 = vector.load %arg19[%c0_149, %c0_150] : memref<32x32xf32, #tpu.memory_space<vmem>>, vector<32x32xf32>
    %cst_151 = arith.constant dense<0.000000e+00> : vector<2x32xf32>
    %306 = tpu.matmul %304, %305, %cst_151 {dimension_numbers = #tpu.dot_dimension_numbers<[1], [0], [0], [1], [0, 0, 1, 1], [], []>} : vector<2x32xf32>, vector<32x32xf32>, vector<2x32xf32> -> vector<2x32xf32>
    %c0_152 = arith.constant 0 : index
    %c0_153 = arith.constant 0 : index
    %307 = vector.load %arg20[%c0_152, %c0_153] : memref<1x32xf32, #tpu.memory_space<vmem>>, vector<1x32xf32>
    %308 = vector.broadcast %307 : vector<1x32xf32> to vector<2x32xf32>
    %309 = arith.addf %306, %308 : vector<2x32xf32>
    %310 = math.tanh %309 : vector<2x32xf32>
    %c0_154 = arith.constant 0 : index
    %c0_155 = arith.constant 0 : index
    %311 = vector.load %arg21[%c0_154, %c0_155] : memref<32x128xf32, #tpu.memory_space<vmem>>, vector<32x128xf32>
    %cst_156 = arith.constant dense<0.000000e+00> : vector<2x128xf32>
    %312 = tpu.matmul %310, %311, %cst_156 {dimension_numbers = #tpu.dot_dimension_numbers<[1], [0], [0], [1], [0, 0, 1, 1], [], []>} : vector<2x32xf32>, vector<32x128xf32>, vector<2x128xf32> -> vector<2x128xf32>
    %c0_157 = arith.constant 0 : index
    %c0_158 = arith.constant 0 : index
    %313 = vector.load %arg22[%c0_157, %c0_158] : memref<1x128xf32, #tpu.memory_space<vmem>>, vector<1x128xf32>
    %314 = vector.broadcast %313 : vector<1x128xf32> to vector<2x128xf32>
    %315 = arith.addf %312, %314 : vector<2x128xf32>
    %c0_159 = arith.constant 0 : index
    %c0_160 = arith.constant 0 : index
    %316 = vector.load %arg23[%c0_159, %c0_160] : memref<2x128xf32, #tpu.memory_space<vmem>>, vector<2x128xf32>
    tpu.vector_store %arg23[%c0_159, %c0_160], %315 {strides = array<i32>} : memref<2x128xf32, #tpu.memory_space<vmem>>, vector<2x128xf32>,
    return
  }
  func.func @transform_0(%arg0: i32) -> (i32, i32) {
    %c0_i32 = arith.constant 0 : i32
    %c0_i32_0 = arith.constant 0 : i32
    %c0_i32_1 = arith.constant 0 : i32
    return %c0_i32, %c0_i32_0 : i32, i32
  }
  func.func @transform_1(%arg0: i32) -> (i32, i32) {
    %c0_i32 = arith.constant 0 : i32
    %c0_i32_0 = arith.constant 0 : i32
    %c0_i32_1 = arith.constant 0 : i32
    return %c0_i32, %c0_i32_0 : i32, i32
  }
  func.func @transform_2(%arg0: i32) -> (i32, i32) {
    %c0_i32 = arith.constant 0 : i32
    %c0_i32_0 = arith.constant 0 : i32
    %c0_i32_1 = arith.constant 0 : i32
    return %c0_i32, %c0_i32_0 : i32, i32
  }
  func.func @transform_3(%arg0: i32) -> (i32, i32) {
    %c0_i32 = arith.constant 0 : i32
    %c0_i32_0 = arith.constant 0 : i32
    %c0_i32_1 = arith.constant 0 : i32
    return %c0_i32, %c0_i32_0 : i32, i32
  }
  func.func @transform_4(%arg0: i32) -> (i32, i32, i32) {
    %c0_i32 = arith.constant 0 : i32
    %c0_i32_0 = arith.constant 0 : i32
    %c0_i32_1 = arith.constant 0 : i32
    %c0_i32_2 = arith.constant 0 : i32
    return %c0_i32, %c0_i32_0, %c0_i32_1 : i32, i32, i32
  }
  func.func @transform_5(%arg0: i32) -> (i32, i32, i32) {
    %c0_i32 = arith.constant 0 : i32
    %c0_i32_0 = arith.constant 0 : i32
    %c0_i32_1 = arith.constant 0 : i32
    %c0_i32_2 = arith.constant 0 : i32
    return %c0_i32, %c0_i32_0, %c0_i32_1 : i32, i32, i32
  }
  func.func @transform_6(%arg0: i32) -> (i32, i32, i32) {
    %c0_i32 = arith.constant 0 : i32
    %c0_i32_0 = arith.constant 0 : i32
    %c0_i32_1 = arith.constant 0 : i32
    %c0_i32_2 = arith.constant 0 : i32
    return %c0_i32, %c0_i32_0, %c0_i32_1 : i32, i32, i32
  }
  func.func @transform_7(%arg0: i32) -> (i32, i32, i32) {
    %c0_i32 = arith.constant 0 : i32
    %c0_i32_0 = arith.constant 0 : i32
    %c0_i32_1 = arith.constant 0 : i32
    %c0_i32_2 = arith.constant 0 : i32
    return %c0_i32, %c0_i32_0, %c0_i32_1 : i32, i32, i32
  }
  func.func @transform_8(%arg0: i32) -> (i32, i32, i32) {
    %c0_i32 = arith.constant 0 : i32
    %c0_i32_0 = arith.constant 0 : i32
    %c0_i32_1 = arith.constant 0 : i32
    %c0_i32_2 = arith.constant 0 : i32
    return %c0_i32, %c0_i32_0, %c0_i32_1 : i32, i32, i32
  }
  func.func @transform_9(%arg0: i32) -> (i32, i32, i32) {
    %c0_i32 = arith.constant 0 : i32
    %c0_i32_0 = arith.constant 0 : i32
    %c0_i32_1 = arith.constant 0 : i32
    %c0_i32_2 = arith.constant 0 : i32
    return %c0_i32, %c0_i32_0, %c0_i32_1 : i32, i32, i32
  }
  func.func @transform_10(%arg0: i32) -> (i32, i32, i32) {
    %c0_i32 = arith.constant 0 : i32
    %c0_i32_0 = arith.constant 0 : i32
    %c0_i32_1 = arith.constant 0 : i32
    %c0_i32_2 = arith.constant 0 : i32
    return %c0_i32, %c0_i32_0, %c0_i32_1 : i32, i32, i32
  }
  func.func @transform_11(%arg0: i32) -> (i32, i32, i32) {
    %c0_i32 = arith.constant 0 : i32
    %c0_i32_0 = arith.constant 0 : i32
    %c0_i32_1 = arith.constant 0 : i32
    %c0_i32_2 = arith.constant 0 : i32
    return %c0_i32, %c0_i32_0, %c0_i32_1 : i32, i32, i32
  }
  func.func @transform_12(%arg0: i32) -> (i32, i32, i32) {
    %c0_i32 = arith.constant 0 : i32
    %c0_i32_0 = arith.constant 0 : i32
    %c0_i32_1 = arith.constant 0 : i32
    %c0_i32_2 = arith.constant 0 : i32
    return %c0_i32, %c0_i32_0, %c0_i32_1 : i32, i32, i32
  }
  func.func @transform_13(%arg0: i32) -> (i32, i32, i32) {
    %c0_i32 = arith.constant 0 : i32
    %c0_i32_0 = arith.constant 0 : i32
    %c0_i32_1 = arith.constant 0 : i32
    %c0_i32_2 = arith.constant 0 : i32
    return %c0_i32, %c0_i32_0, %c0_i32_1 : i32, i32, i32
  }
  func.func @transform_14(%arg0: i32) -> (i32, i32, i32) {
    %c0_i32 = arith.constant 0 : i32
    %c0_i32_0 = arith.constant 0 : i32
    %c0_i32_1 = arith.constant 0 : i32
    %c0_i32_2 = arith.constant 0 : i32
    return %c0_i32, %c0_i32_0, %c0_i32_1 : i32, i32, i32
  }
  func.func @transform_15(%arg0: i32) -> (i32, i32, i32) {
    %c0_i32 = arith.constant 0 : i32
    %c0_i32_0 = arith.constant 0 : i32
    %c0_i32_1 = arith.constant 0 : i32
    %c0_i32_2 = arith.constant 0 : i32
    return %c0_i32, %c0_i32_0, %c0_i32_1 : i32, i32, i32
  }
  func.func @transform_16(%arg0: i32) -> (i32, i32) {
    %c0_i32 = arith.constant 0 : i32
    %c0_i32_0 = arith.constant 0 : i32
    %c0_i32_1 = arith.constant 0 : i32
    return %c0_i32, %c0_i32_0 : i32, i32
  }
  func.func @transform_17(%arg0: i32) -> (i32, i32) {
    %c0_i32 = arith.constant 0 : i32
    %c0_i32_0 = arith.constant 0 : i32
    %c0_i32_1 = arith.constant 0 : i32
    return %c0_i32, %c0_i32_0 : i32, i32
  }
  func.func @transform_18(%arg0: i32) -> (i32, i32) {
    %c0_i32 = arith.constant 0 : i32
    %c0_i32_0 = arith.constant 0 : i32
    %c0_i32_1 = arith.constant 0 : i32
    return %c0_i32, %c0_i32_0 : i32, i32
  }
  func.func @transform_19(%arg0: i32) -> (i32, i32) {
    %c0_i32 = arith.constant 0 : i32
    %c0_i32_0 = arith.constant 0 : i32
    %c0_i32_1 = arith.constant 0 : i32
    return %c0_i32, %c0_i32_0 : i32, i32
  }
  func.func @transform_20(%arg0: i32) -> (i32, i32) {
    %c0_i32 = arith.constant 0 : i32
    %c0_i32_0 = arith.constant 0 : i32
    %c0_i32_1 = arith.constant 0 : i32
    return %c0_i32, %c0_i32_0 : i32, i32
  }
  func.func @transform_21(%arg0: i32) -> (i32, i32) {
    %c0_i32 = arith.constant 0 : i32
    %c0_i32_0 = arith.constant 0 : i32
    %c0_i32_1 = arith.constant 0 : i32
    return %c0_i32, %c0_i32_0 : i32, i32
  }
  func.func @transform_22(%arg0: i32) -> (i32, i32) {
    %c0_i32 = arith.constant 0 : i32
    %c0_i32_0 = arith.constant 0 : i32
    %c0_i32_1 = arith.constant 0 : i32
    return %c0_i32, %c0_i32_0 : i32, i32
  }
}

</mosaic_0001>

<bundles_post_ra>
// kernel: tpu_custom_call.1
= control target key start
LH: loop header
LB: loop body
LE: loop exit
PB: predicated region body
PF: predicated region fallthrough
CT: control target
= control target key end

     0   :  { %s3792_s0 = inlined_call_operand.vmem [shape: f32[10,192], index: 0, kind: input, shape index: {}]   ;;  %s3793_s1 = inlined_call_operand.vmem [shape: f32[10,32], index: 1, kind: input, shape index: {}]   ;;  %s3794_s2 = inlined_call_operand.vmem [shape: f32[10,10], index: 2, kind: input, shape index: {}]   ;;  %s3795_s3 = inlined_call_operand.vmem [shape: f32[192,32], index: 3, kind: input, shape index: {}]   ;;  %s3796_s4 = inlined_call_operand.vmem [shape: f32[2,1,32], index: 4, kind: input, shape index: {}]   ;;  %s3797_s5 = inlined_call_operand.vmem [shape: f32[2,1,32], index: 5, kind: input, shape index: {}]   ;;  %s3798_s6 = inlined_call_operand.vmem [shape: f32[2,32,96], index: 6, kind: input, shape index: {}]   ;;  %s3799_s7 = inlined_call_operand.vmem [shape: f32[2,1,96], index: 7, kind: input, shape index: {}]   ;;  %s3800_s8 = inlined_call_operand.vmem [shape: f32[2,32,32], index: 8, kind: input, shape index: {}]   ;;  %s3801_s9 = inlined_call_operand.vmem [shape: f32[2,1,32], index: 9, kind: input, shape index: {}]   ;;  %s3802_s10 = inlined_call_operand.vmem [shape: f32[2,1,32], index: 10, kind: input, shape index: {}]   ;;  %s3803_s11 = inlined_call_operand.vmem [shape: f32[2,1,32], index: 11, kind: input, shape index: {}]   ;;  %s3804_s12 = inlined_call_operand.vmem [shape: f32[2,32,128], index: 12, kind: input, shape index: {}]   ;;  %s3805_s13 = inlined_call_operand.vmem [shape: f32[2,1,128], index: 13, kind: input, shape index: {}]   ;;  %s3806_s14 = inlined_call_operand.vmem [shape: f32[2,128,32], index: 14, kind: input, shape index: {}]   ;;  %s3807_s15 = inlined_call_operand.vmem [shape: f32[2,1,32], index: 15, kind: input, shape index: {}]   ;;  %s3808_s16 = inlined_call_operand.vmem [shape: f32[1,32], index: 16, kind: input, shape index: {}]   ;;  %s3809_s17 = inlined_call_operand.vmem [shape: f32[1,32], index: 17, kind: input, shape index: {}]   ;;  %s3810_s18 = inlined_call_operand.vmem [shape: f32[32,32], index: 18, kind: input, shape index: {}]   ;;  %s3811_s19 = inlined_call_operand.vmem [shape: f32[1,32], index: 19, kind: input, shape index: {}]   ;;  %s3812_s20 = inlined_call_operand.vmem [shape: f32[32,128], index: 20, kind: input, shape index: {}]   ;;  %s3813_s21 = inlined_call_operand.vmem [shape: f32[1,128], index: 21, kind: input, shape index: {}]   ;;  %s3814_s22 = inlined_call_operand.hbm [shape: f32[2,128], index: 22, kind: output, shape index: {}]  }
   0x1   :  { %3823 = sst [smem:[#allocation5_spill]] %s3792_s0 }
   0x2   :  { %3824 = sst [smem:[#allocation6_spill]] %s3793_s1 }
   0x3   :  { %3825 = sst [smem:[#allocation7_spill]] %s3794_s2 }
   0x4   :  { %3826 = sst [smem:[#allocation8_spill]] %s3795_s3 }
   0x5   :  { %3827 = sst [smem:[#allocation9_spill]] %s3796_s4 }
   0x6   :  { %3828 = sst [smem:[#allocation10_spill]] %s3797_s5 }
   0x7   :  { %3829 = sst [smem:[#allocation11_spill]] %s3798_s6 }
   0x8   :  { %s3830_s29 = sld [smem:[#allocation8_spill]]  ;;  %v3098_v3 = vmov 0.0|0.0   ;;  %vm102_vm0 = vcmask 523264   ;;  %s3831_s0 = sld [smem:[#allocation5_spill]] }
   0x9   :  { %2768 = vmatprep.subr.bf16.mxu0 %v3098_v3 }
   0xe   :  { %v76_v0 = vld [vmem:[%s3830_s29] sm:$0xff]  ;;  %v77_v1 = vld [vmem:[%s3830_s29 + $0x8] sm:$0xff]  ;;  %v78_v2 = vld [vmem:[%s3830_s29 + $0x10] sm:$0xff] }
   0xf   :  { %v2769_v4 = vpack.c.bf16 %v77_v1, %v76_v0  ;;  %v79_v5 = vld [vmem:[%s3830_s29 + $0x18] sm:$0xff]  ;;  %v80_v7 = vld [vmem:[%s3830_s29 + $0x20] sm:$0xff]  ;;  %v81_v8 = vld [vmem:[%s3830_s29 + $0x28] sm:$0xff] }
  0x10   :  { %v2772_v6 = vpack.c.bf16 %v79_v5, %v78_v2  ;;  %v2775_v9 = vpack.c.bf16 %v81_v8, %v80_v7  ;;  %v82_v10 = vld [vmem:[%s3830_s29 + $0x30] sm:$0xff]  ;;  %v83_v11 = vld [vmem:[%s3830_s29 + $0x38] sm:$0xff]  ;;  %v73_v12 = vld [vmem:[%s3831_s0 + $0x8] sm:$0xff] }
  0x11   :  { %2770 = vmatpush1.bf16.msra.mxu0 %v2769_v4  ;;  %2329 = vmatprep.mubr.msk.f32.mxu0 %vm102_vm0, %v73_v12 }
  0x12   :  { %2771 = vmatprep.subr.bf16.mxu0 %v3098_v3 }
  0x15   :  { %2773 = vmatpush1.bf16.msra.mxu0 %v2772_v6 }
  0x16   :  { %2774 = vmatprep.subr.bf16.mxu0 %v3098_v3 }
  0x17   :  { %27 = vsyncpa [#allocation3], 0  ;;  %v2778_v13 = vpack.c.bf16 %v83_v11, %v82_v10  ;;  %v84_v14 = vld [vmem:[%s3830_s29 + $0x40] sm:$0xff]  ;;  %v85_v15 = vld [vmem:[%s3830_s29 + $0x48] sm:$0xff]  ;;  %s3832_s23 = sld [smem:[#allocation6_spill]]  ;;  %vm188_vm1 = vcmask 261120  }
  0x18   :  { %v2781_v16 = vpack.c.bf16 %v85_v15, %v84_v14  ;;  %v86_v17 = vld [vmem:[%s3830_s29 + $0x50] sm:$0xff]  ;;  %v87_v18 = vld [vmem:[%s3830_s29 + $0x58] sm:$0xff]  ;;  %v88_v20 = vld [vmem:[%s3830_s29 + $0x60] sm:$0xff]  ;;  %vm192_vm2 = vcmask 254976   ;;  %s3833_s6 = sld [smem:[#allocation11_spill]]  ;;  %s3834_s4 = sld [smem:[#allocation9_spill]] }
  0x19   :  { %2776 = vmatpush1.bf16.msra.mxu0 %v2775_v9  ;;  %v2784_v19 = vpack.c.bf16 %v87_v18, %v86_v17  ;;  %v89_v21 = vld [vmem:[%s3830_s29 + $0x68] sm:$0xff]  ;;  %v90_v23 = vld [vmem:[%s3830_s29 + $0x70] sm:$0xff]  ;;  %v91_v24 = vld [vmem:[%s3830_s29 + $0x78] sm:$0xff]  ;;  %s3835_s5 = sld [smem:[#allocation10_spill]]  ;;  %vm335_vm3 = vcmask 130048   ;;  %s3099_s25 = smov 96  }
  0x1a   :  { %2777 = vmatprep.subr.bf16.mxu0 %v3098_v3  ;;  %v2787_v22 = vpack.c.bf16 %v89_v21, %v88_v20  ;;  %v2790_v25 = vpack.c.bf16 %v91_v24, %v90_v23  ;;  %v92_v26 = vld [vmem:[%s3830_s29 + $0x80] sm:$0xff]  ;;  %v93_v27 = vld [vmem:[%s3830_s29 + $0x88] sm:$0xff]  ;;  %v94_v29 = vld [vmem:[%s3830_s29 + $0x90] sm:$0xff]  ;;  %s3100_s26 = smov 80   ;;  %s3101_s2 = smov 112   ;;  %vm423_vm5 = vcmask 80896  }
  0x1b   :  { %v2793_v28 = vpack.c.bf16 %v93_v27, %v92_v26  ;;  %v95_v30 = vld [vmem:[%s3830_s29 + $0x98] sm:$0xff]  ;;  %v96_v32 = vld [vmem:[%s3830_s29 + $0xa0] sm:$0xff]  ;;  %v97_v33 = vld [vmem:[%s3830_s29 + $0xa8] sm:$0xff]  ;;  %s3838_s28 = sld [smem:[#allocation7_spill]]  ;;  %vm427_vm6 = vcmask 74752   ;;  %vm458_vm7 = vcmask 1041408  }
  0x1c   :  { %v2796_v31 = vpack.c.bf16 %v95_v30, %v94_v29  ;;  %v2799_v34 = vpack.c.bf16 %v97_v33, %v96_v32  ;;  %v98_v35 = vld [vmem:[%s3830_s29 + $0xb0] sm:$0xff]  ;;  %v99_v36 = vld [vmem:[%s3830_s29 + $0xb8] sm:$0xff]  ;;  %v72_v38 = vld [vmem:[%s3831_s0] sm:$0xff]  ;;  %vm3103_vm8 = vmmov 1   ;;  %s3822_s1 = smov 48   ;;  %vm3105_vm10 = vmmov 0  }
  0x1d   :  { %2779 = vmatpush1.bf16.msra.mxu0 %v2778_v13  ;;  %v2802_v37 = vpack.c.bf16 %v99_v36, %v98_v35  ;;  %v75_v39 = vld [vmem:[%s3831_s0 + $0x18] sm:$0x3]  ;;  %v74_v40 = vld [vmem:[%s3831_s0 + $0x10] sm:$0x3]  ;;  %v100_v41 = vld [vmem:[%s3832_s23] sm:$0xff] }
  0x1e   :  { %2780 = vmatprep.subr.bf16.mxu0 %v3098_v3  ;;  %v101_v45 = vld [vmem:[%s3832_s23 + $0x8] sm:$0x3]  ;;  %v233_v61 = vld [vmem:[%s3833_s6] sm:$0xff]  ;;  %v235_v63 = vld [vmem:[%s3833_s6 + $0x10] sm:$0xff]  ;;  %s3102_s23 = smov 64  }
  0x1f   :  { %v234_v62 = vld [vmem:[%s3833_s6 + $0x8] sm:$0xff]  ;;  %v236_v1 = vld [vmem:[%s3833_s6 + $0x18] sm:$0xff]  ;;  %v2331_v11 = vld [vmem:[%s3834_s4] ss:$0 sm:$0xff] }
  0x20   :  { %v2804_v0 = vpack.c.bf16 %v234_v62, %v233_v61  ;;  %v2808_v2 = vpack.c.bf16 %v236_v1, %v235_v63  ;;  %v2332_v13 = vld [vmem:[%s3835_s5] ss:$0 sm:$0xff]  ;;  %vm3373_vm4 = vmpackc.low %vm335_vm3, %vm335_vm3  ;;  %v2376_v61 = vld [vmem:[%s3800_s8 + $0x38] sm:$0xff] }
  0x21   :  { %2782 = vmatpush1.bf16.msra.mxu0 %v2781_v16  ;;  %v2333_v20 = vld [vmem:[%s3799_s7] ss:$0 sm:$0xff]  ;;  %v3390_v36 = vld [vmem:[%s3838_s28 + $0x8] sm:$0x3]  ;;  %vm3400_vm9 = vmpackc.low %vm458_vm7, %vm3103_vm8 }
  0x22   :  { %2783 = vmatprep.subr.bf16.mxu0 %v3098_v3  ;;  %2805 = vmatprep.subr.bf16.mxu1 %v2804_v0  ;;  %v3385_v33 = vld [vmem:[%s3838_s28] sm:$0xff] }
  0x23   :  { %2807 = vmatpush3.bf16.msra.mxu1 %v2804_v0 }
  0x24   :  { %2809 = vmatprep.subr.bf16.mxu1 %v2808_v2 }
  0x25   :  { %2785 = vmatpush1.bf16.msra.mxu0 %v2784_v19 }
  0x26   :  { %2786 = vmatprep.subr.bf16.mxu0 %v3098_v3 }
  0x27   :  { %2811 = vmatpush3.bf16.msra.mxu1 %v2808_v2 }
  0x29   :  { %2788 = vmatpush1.bf16.msra.mxu0 %v2787_v22 }
  0x2a   :  { %2789 = vmatprep.subr.bf16.mxu0 %v3098_v3 }
  0x2d   :  { %2791 = vmatpush1.bf16.msra.mxu0 %v2790_v25 }
  0x2e   :  { %2792 = vmatprep.subr.bf16.mxu0 %v3098_v3 }
  0x31   :  { %2794 = vmatpush1.bf16.msra.mxu0 %v2793_v28 }
  0x32   :  { %2795 = vmatprep.subr.bf16.mxu0 %v3098_v3 }
  0x35   :  { %2797 = vmatpush1.bf16.msra.mxu0 %v2796_v31 }
  0x36   :  { %2798 = vmatprep.subr.bf16.mxu0 %v3098_v3 }
  0x39   :  { %2800 = vmatpush1.bf16.msra.mxu0 %v2799_v34 }
  0x3a   :  { %2801 = vmatprep.subr.bf16.mxu0 %v3098_v3 }
  0x3d   :  { %2803 = vmatpush1.bf16.msra.mxu0 %v2802_v37 }
  0x40   :  { %174 = vmatmul.mubr.f32.vlgmr.msra.gmra.mrb[0].mxu0 %v72_v38 }
  0x41   :  { %2330 = vmatprep.mubr.msk.f32.mxu0 %vm102_vm0, %v75_v39 }
  0x44   :  { %179 = vmatmul.mubr.f32.gmra.mrb[2].mxu0 %v74_v40 }
 0x113   :  { %v175_v42 = vpop.f32.mrb[0].mxu0 }
 0x114   :  { %v3324_v43 = vadd.f32 %v175_v42, %v100_v41  ;;  %v177_v44 = vpop.f32.mrb[1].mxu0 }
 0x116   :  { %v189_v46 = vsel %vm188_vm1, %v3324_v43, 0.0 }
 0x117   :  { %v180_v47 = vpop.f32.mrb[2].mxu0  ;;  %190 = vadd.xlane.f32.xlu0 %v189_v46 }
 0x118   :  { %v3331_v48 = vadd.f32 %v180_v47, %v101_v45  ;;  %v182_v49 = vpop.f32.mrb[3].mxu0 }
 0x11a   :  { %v193_v50 = vsel %vm192_vm2, %v3331_v48, 0.0 }
 0x11b   :  { %194 = vadd.xlane.f32.xlu0 %v193_v50 }
 0x1a4   :  { %v191_v51 = vpop.xlane.xlu0 %190 }
 0x1a5   :  { %v197_v52 = vmul.f32 0.03125, %v191_v51 }
 0x1a7   :  { %v199_v53 = vsub.f32 %v3324_v43, %v197_v52 }
 0x1a8   :  { %v195_v54 = vpop.xlane.xlu0 %194 }
 0x1a9   :  { %v198_v55 = vmul.f32 0.03125, %v195_v54  ;;  %v201_v56 = vmul.f32 %v199_v53, %v199_v53 }
 0x1ab   :  { %v200_v57 = vsub.f32 %v3331_v48, %v198_v55  ;;  %v203_v58 = vsel %vm188_vm1, %v201_v56, 0.0 }
 0x1ac   :  { %204 = vadd.xlane.f32.xlu1 %v203_v58 }
 0x1ad   :  { %v202_v59 = vmul.f32 %v200_v57, %v200_v57 }
 0x1af   :  { %v206_v60 = vsel %vm192_vm2, %v202_v59, 0.0 }
 0x1b0   :  { %207 = vadd.xlane.f32.xlu1 %v206_v60 }
 0x239   :  { %v205_v4 = vpop.xlane.xlu1 %204 }
 0x23a   :  { %v209_v5 = vmul.f32 0.03125, %v205_v4 }
 0x23c   :  { %v211_v6 = vadd.f32 1e-12, %v209_v5 }
 0x23d   :  { %v208_v7 = vpop.xlane.xlu1 %207 }
 0x23e   :  { %3018 = vrsqrt.f32 %v211_v6  ;;  %v210_v8 = vmul.f32 0.03125, %v208_v7 }
 0x240   :  { %v212_v9 = vadd.f32 1e-12, %v210_v8 }
 0x242   :  { %3020 = vrsqrt.f32 %v212_v9 }
 0x248   :  { %v3019_v10 = vpop.eup %3018 }
 0x249   :  { %v215_v12 = vmul.f32 %v3019_v10, %v199_v53 }
 0x24b   :  { %v223_v14 = vmul.f32 %v2331_v11, %v215_v12 }
 0x24c   :  { %v3021_v15 = vpop.eup %3020 }
 0x24d   :  { %v216_v16 = vmul.f32 %v3021_v15, %v200_v57  ;;  %v231_v17 = vadd.f32 %v2332_v13, %v223_v14 }
 0x24f   :  { %v224_v18 = vmul.f32 %v2331_v11, %v216_v16  ;;  %2556 = vmatprep.mubr.msk.f32.mxu1 %vm188_vm1, %v231_v17 }
 0x251   :  { %v232_v19 = vadd.f32 %v2332_v13, %v224_v18 }
 0x253   :  { %2557 = vmatmul.mubr.msk.f32.vlgmr.msra.gmra.mrb[0].mxu1 %vm188_vm1, %v232_v19 }
 0x326   :  { %v2558_v21 = vpop.f32.mrb[0].mxu1 }
 0x327   :  { %v322_v22 = vadd.f32 %v2558_v21, %v2333_v20  ;;  %v316_v23 = vpop.f32.mrb[1].mxu1 }
 0x328   :  { %v317_v24 = vadd.f32 %v2333_v20, %v316_v23 }
 0x32a   :  { %2563 = vmatprep.mubr.msk.f32.mxu1 %vm335_vm3, %v317_v24  ;;  %v3363_v25 = vpack.i.bf16 %v322_v22, %v317_v24 }
 0x32c   :  { %2979 = vrot.lane.b32.xlu0 %v3363_v25, %s3099_s25 }
 0x330   :  { %2989 = vrot.lane.b32.xlu0 %v3363_v25, %s3100_s26 }
 0x334   :  { %536 = vrot.lane.b32.xlu0 %v317_v24, %s3101_s2 }
 0x338   :  { %538 = vrot.lane.b32.xlu0 %v322_v22, %s3101_s2 }
 0x39e   :  { %v2980_v26 = vpop.permute.xlu0 %2979 }
 0x39f   :  { %v2982_v27 = vunpack.i.h.bf16 %v2980_v26  ;;  %v2981_v28 = vunpack.i.l.bf16 %v2980_v26 }
 0x3a1   :  { %v2812_v30 = vpack.c.bf16 %v2982_v27, %v2981_v28 }
 0x3a2   :  { %v2990_v55 = vpop.permute.xlu0 %2989 }
 0x3a3   :  { %2814 = vmatprep.subr.msk.bf16.mxu1 %vm3373_vm4, %v2812_v30  ;;  %v2992_v57 = vunpack.i.h.bf16 %v2990_v55  ;;  %v2991_v58 = vunpack.i.l.bf16 %v2990_v55 }
 0x3a4   :  { %2817 = vmatpush3.bf16.xpose.msk.msra.mxu1 %vm3373_vm4, %v2812_v30 }
 0x3a5   :  { %v2824_v63 = vpack.c.bf16 %v2992_v57, %v2991_v58 }
 0x3a6   :  { %v537_v5 = vpop.permute.xlu0 %536 }
 0x3aa   :  { %v539_v6 = vpop.permute.xlu0 %538 }
 0x3ab   :  { %2564 = vmatmul.mubr.msk.f32.vlgmr.msra.gmra.mrb[2].mxu1 %vm335_vm3, %v322_v22 }
 0x47e   :  { %v2565_v31 = vpop.f32.mrb[2].mxu1 }
 0x47f   :  { %v410_v32 = vpop.f32.mrb[3].mxu1  ;;  %v420_v34 = vmul.f32 0.25, %v2565_v31 }
 0x480   :  { %v419_v35 = vmul.f32 0.25, %v410_v32  ;;  %v327_v32 = vld [vmem:[%s3800_s8 + $0x10] sm:$0xff] }
 0x481   :  { %v422_v39 = vadd.f32 %v420_v34, %v3390_v36  ;;  %v328_v34 = vld [vmem:[%s3800_s8 + $0x18] sm:$0xff] }
 0x482   :  { %v421_v37 = vadd.f32 %v419_v35, %v3385_v33  ;;  %v2836_v35 = vpack.c.bf16 %v328_v34, %v327_v32  ;;  %v1071_v32 = vld [vmem:[%s3806_s14 + $0x18] sm:$0xff] }
 0x483   :  { %v428_v40 = vsel %vm427_vm6, %v422_v39, -inf }
 0x484   :  { %v424_v38 = vsel %vm423_vm5, %v421_v37, -inf }
 0x485   :  { %425 = vmax.xlane.f32.xlu1 %v424_v38 }
 0x489   :  { %429 = vmax.xlane.f32.xlu1 %v428_v40 }
 0x512   :  { %v426_v41 = vpop.xlane.xlu1 %425 }
 0x513   :  { %v431_v42 = vsub.f32 %v421_v37, %v426_v41 }
 0x515   :  { %v433_v46 = vmul.f32 1.442695, %v431_v42 }
 0x516   :  { %v430_v44 = vpop.xlane.xlu1 %429 }
 0x517   :  { %v432_v45 = vsub.f32 %v422_v39, %v430_v44  ;;  %v325_v44 = vld [vmem:[%s3800_s8] sm:$0xff] }
 0x519   :  { %v435_v47 = vmul.f32 1.442695, %v432_v45  ;;  %v326_v45 = vld [vmem:[%s3800_s8 + $0x8] sm:$0xff] }
 0x51b   :  { %3022 = vpow2.f32 %v435_v47 }
 0x51c   :  { %3024 = vpow2.f32 %v433_v46  ;;  %v2840_v46 = vpack.c.bf16 %v326_v45, %v325_v44  ;;  %v1077_v44 = vld [vmem:[%s3806_s14 + $0x48] sm:$0xff] }
 0x525   :  { %v3023_v49 = vpop.eup %3022 }
 0x526   :  { %v440_v50 = vsel %vm427_vm6, %v3023_v49, 0.0  ;;  %v3025_v51 = vpop.eup %3024 }
 0x527   :  { %441 = vadd.xlane.f32.xlu1 %v440_v50  ;;  %v437_v52 = vsel %vm423_vm5, %v3025_v51, 0.0 }
 0x52b   :  { %438 = vadd.xlane.f32.xlu1 %v437_v52 }
 0x53c   :  { %2984 = vrot.lane.b32.xlu1 %v3363_v25, %s3102_s23 }
 0x5b4   :  { %v442_v53 = vpop.xlane.xlu1 %441 }
 0x5b5   :  { %3026 = vrcp.f32 %v442_v53 }
 0x5b8   :  { %v439_v54 = vpop.xlane.xlu1 %438 }
 0x5b9   :  { %3028 = vrcp.f32 %v439_v54 }
 0x5bc   :  { %v2985_v56 = vpop.permute.xlu1 %2984 }
 0x5bd   :  { %v2987_v59 = vunpack.i.h.bf16 %v2985_v56  ;;  %v2986_v60 = vunpack.i.l.bf16 %v2985_v56 }
 0x5bf   :  { %v2818_v62 = vpack.c.bf16 %v2987_v59, %v2986_v60  ;;  %v3027_v0 = vpop.eup %3026 }
 0x5c0   :  { %v446_v4 = vmul.f32 %v3027_v0, %v3023_v49 }
 0x5c1   :  { %2820 = vmatprep.subr.msk.bf16.mxu1 %vm3400_vm9, %v2818_v62 }
 0x5c2   :  { %2823 = vmatpush3.bf16.msk.msra.mxu1 %vm3400_vm9, %v2818_v62 }
 0x5c3   :  { %v3029_v1 = vpop.eup %3028  ;;  %2826 = vmatprep.subr.msk.bf16.mxu1 %vm3373_vm4, %v2824_v63 }
 0x5c4   :  { %v444_v2 = vmul.f32 %v3029_v1, %v3025_v51  ;;  %v2354_v51 = vld [vmem:[%s3801_s9] ss:$0 sm:$0xff] }
 0x5c6   :  { %2570 = vmatprep.mubr.msk.f32.mxu1 %vm423_vm5, %v444_v2 }
 0x5c7   :  { %2571 = vmatmul.mubr.msk.f32.vlgmr.msra.gmra.mrb[4].mxu1 %vm423_vm5, %v446_v4 }
 0x5c8   :  { %2577 = vmatprep.mubr.msk.f32.mxu1 %vm335_vm3, %v537_v5  ;;  %v958_v5 = vld [vmem:[%s3804_s12] sm:$0xff] }
 0x5cb   :  { %2829 = vmatpush3.bf16.xpose.msk.msra.mxu1 %vm3373_vm4, %v2824_v63 }
 0x5d2   :  { %2578 = vmatmul.mubr.msk.f32.vlgmr.msra.gmra.mrb[6].mxu1 %vm335_vm3, %v539_v6  ;;  %v959_v6 = vld [vmem:[%s3804_s12 + $0x8] sm:$0xff] }
 0x69a   :  { %v2572_v7 = vpop.f32.mrb[4].mxu1 }
 0x69b   :  { %v527_v8 = vpop.f32.mrb[5].mxu1 }
 0x6a5   :  { %v2579_v9 = vpop.f32.mrb[6].mxu1 }
 0x6a6   :  { %v628_v10 = vmul.f32 0.25, %v2579_v9  ;;  %v618_v11 = vpop.f32.mrb[7].mxu1  ;;  %v961_v9 = vld [vmem:[%s3804_s12 + $0x18] sm:$0xff] }
 0x6a7   :  { %v627_v12 = vmul.f32 0.25, %v618_v11 }
 0x6a8   :  { %v630_v13 = vadd.f32 %v628_v10, %v3390_v36 }
 0x6a9   :  { %v629_v14 = vadd.f32 %v627_v12, %v3385_v33 }
 0x6aa   :  { %v634_v15 = vsel %vm427_vm6, %v630_v13, -inf }
 0x6ab   :  { %635 = vmax.xlane.f32.xlu0 %v634_v15  ;;  %v631_v16 = vsel %vm423_vm5, %v629_v14, -inf }
 0x6ac   :  { %632 = vmax.xlane.f32.xlu1 %v631_v16 }
 0x6bd   :  { %2994 = vrot.lane.b32.xlu1 %v3363_v25, %s3822_s1 }
 0x738   :  { %v636_v17 = vpop.xlane.xlu0 %635 }
 0x739   :  { %v638_v18 = vsub.f32 %v630_v13, %v636_v17  ;;  %v633_v19 = vpop.xlane.xlu1 %632 }
 0x73a   :  { %v637_v20 = vsub.f32 %v629_v14, %v633_v19 }
 0x73b   :  { %v641_v21 = vmul.f32 1.442695, %v638_v18  ;;  %v2355_v18 = vld [vmem:[%s3802_s10] ss:$0 sm:$0xff] }
 0x73c   :  { %v639_v22 = vmul.f32 1.442695, %v637_v20  ;;  %v2356_v20 = vld [vmem:[%s3803_s11] ss:$0 sm:$0xff] }
 0x73d   :  { %v2995_v23 = vpop.permute.xlu1 %2994 }
 0x73e   :  { %3030 = vpow2.f32 %v639_v22  ;;  %v2997_v24 = vunpack.i.h.bf16 %v2995_v23  ;;  %v2996_v26 = vunpack.i.l.bf16 %v2995_v23 }
 0x73f   :  { %3032 = vpow2.f32 %v641_v21 }
 0x740   :  { %v2830_v27 = vpack.c.bf16 %v2997_v24, %v2996_v26 }
 0x742   :  { %2832 = vmatprep.subr.msk.bf16.mxu1 %vm3400_vm9, %v2830_v27 }
 0x743   :  { %2835 = vmatpush3.bf16.msk.msra.mxu1 %vm3400_vm9, %v2830_v27 }
 0x744   :  { %2837 = vmatprep.subr.bf16.mxu1 %v2836_v35 }
 0x748   :  { %v3031_v28 = vpop.eup %3030 }
 0x749   :  { %v643_v25 = vsel %vm423_vm5, %v3031_v28, 0.0  ;;  %v3033_v30 = vpop.eup %3032 }
 0x74a   :  { %644 = vadd.xlane.f32.xlu0 %v643_v25  ;;  %v646_v31 = vsel %vm427_vm6, %v3033_v30, 0.0  ;;  %v1069_v25 = vld [vmem:[%s3806_s14 + $0x8] sm:$0xff] }
 0x74e   :  { %647 = vadd.xlane.f32.xlu0 %v646_v31  ;;  %v1070_v31 = vld [vmem:[%s3806_s14 + $0x10] sm:$0xff] }
 0x74f   :  { %v2856_v34 = vpack.c.bf16 %v1071_v32, %v1070_v31 }
 0x7d7   :  { %v645_v37 = vpop.xlane.xlu0 %644 }
 0x7d8   :  { %3034 = vrcp.f32 %v645_v37  ;;  %v1073_v37 = vld [vmem:[%s3806_s14 + $0x28] sm:$0xff] }
 0x7db   :  { %v648_v38 = vpop.xlane.xlu0 %647 }
 0x7dc   :  { %3036 = vrcp.f32 %v648_v38 }
 0x7e2   :  { %v3035_v39 = vpop.eup %3034 }
 0x7e3   :  { %v650_v40 = vmul.f32 %v3035_v39, %v3031_v28  ;;  %v1068_v28 = vld [vmem:[%s3806_s14] sm:$0xff]  ;;  %v1074_v39 = vld [vmem:[%s3806_s14 + $0x30] sm:$0xff] }
 0x7e5   :  { %2584 = vmatprep.mubr.msk.f32.mxu1 %vm423_vm5, %v650_v40  ;;  %v1075_v40 = vld [vmem:[%s3806_s14 + $0x38] sm:$0xff] }
 0x7e6   :  { %v3037_v41 = vpop.eup %3036 }
 0x7e7   :  { %v652_v42 = vmul.f32 %v3037_v41, %v3033_v30  ;;  %v2852_v30 = vpack.c.bf16 %v1069_v25, %v1068_v28  ;;  %v2864_v41 = vpack.c.bf16 %v1075_v40, %v1074_v39  ;;  %v2367_v40 = vld [vmem:[%s3833_s6 + $0x30] sm:$0xff] }
 0x7e9   :  { %2585 = vmatmul.mubr.msk.f32.vlgmr.msra.gmra.mrb[8].mxu1 %vm423_vm5, %v652_v42  ;;  %2853 = vmatprep.subr.bf16.mxu0 %v2852_v30  ;;  %v1076_v42 = vld [vmem:[%s3806_s14 + $0x40] sm:$0xff] }
 0x7ea   :  { %2839 = vmatpush3.bf16.msra.mxu1 %v2836_v35  ;;  %2855 = vmatpush3.bf16.msra.mxu0 %v2852_v30  ;;  %v1072_v35 = vld [vmem:[%s3806_s14 + $0x20] sm:$0xff]  ;;  %v2868_v45 = vpack.c.bf16 %v1077_v44, %v1076_v42 }
 0x7eb   :  { %2841 = vmatprep.subr.bf16.mxu1 %v2840_v46  ;;  %2857 = vmatprep.subr.bf16.mxu0 %v2856_v34  ;;  %v2860_v38 = vpack.c.bf16 %v1073_v37, %v1072_v35  ;;  %v2365_v37 = vld [vmem:[%s3833_s6 + $0x20] sm:$0xff] }
 0x7ee   :  { %2859 = vmatpush3.bf16.msra.mxu0 %v2856_v34 }
 0x7ef   :  { %2861 = vmatprep.subr.bf16.mxu0 %v2860_v38 }
 0x7f2   :  { %2863 = vmatpush3.bf16.msra.mxu0 %v2860_v38  ;;  %v2366_v38 = vld [vmem:[%s3833_s6 + $0x28] sm:$0xff] }
 0x7f3   :  { %2865 = vmatprep.subr.bf16.mxu0 %v2864_v41  ;;  %v2884_v39 = vpack.c.bf16 %v2366_v38, %v2365_v37 }
 0x7f6   :  { %2867 = vmatpush3.bf16.msra.mxu0 %v2864_v41  ;;  %v2368_v41 = vld [vmem:[%s3833_s6 + $0x38] sm:$0xff] }
 0x7f7   :  { %2869 = vmatprep.subr.bf16.mxu0 %v2868_v45  ;;  %v2888_v42 = vpack.c.bf16 %v2368_v41, %v2367_v40 }
 0x7fa   :  { %2871 = vmatpush3.bf16.msra.mxu0 %v2868_v45 }
 0x8bc   :  { %v2586_v47 = vpop.f32.mrb[8].mxu1 }
 0x8bd   :  { %v732_v49 = vpop.f32.mrb[9].mxu1 }
 0x8be   :  { %2591 = vmatprep.mubr.msk.f32.mxu1 %vm335_vm3, %v732_v49 }
 0x8bf   :  { %2592 = vmatmul.mubr.msk.f32.vlgmr.msra.gmra.mrb[10].mxu1 %vm335_vm3, %v2586_v47  ;;  %v1079_v47 = vld [vmem:[%s3806_s14 + $0x58] sm:$0xff] }
 0x8c0   :  { %2843 = vmatpush3.bf16.msra.mxu1 %v2840_v46  ;;  %2598 = vmatprep.mubr.msk.f32.mxu1 %vm335_vm3, %v527_v8  ;;  %v960_v8 = vld [vmem:[%s3804_s12 + $0x10] sm:$0xff] }
 0x8c1   :  { %v2848_v10 = vpack.c.bf16 %v961_v9, %v960_v8  ;;  %v1078_v46 = vld [vmem:[%s3806_s14 + $0x50] sm:$0xff] }
 0x8c2   :  { %v2872_v49 = vpack.c.bf16 %v1079_v47, %v1078_v46 }
 0x8c4   :  { %2873 = vmatprep.subr.bf16.mxu0 %v2872_v49 }
 0x8c5   :  { %2875 = vmatpush3.bf16.msra.mxu0 %v2872_v49 }
 0x8c7   :  { %2599 = vmatmul.mubr.msk.f32.vlgmr.msra.gmra.mrb[10].mxu1 %vm335_vm3, %v2572_v7  ;;  %v2844_v7 = vpack.c.bf16 %v959_v6, %v958_v5 }
 0x8c9   :  { %2845 = vmatprep.subr.bf16.mxu1 %v2844_v7 }
 0x8ca   :  { %2847 = vmatpush3.bf16.msra.mxu1 %v2844_v7 }
 0x8cb   :  { %2849 = vmatprep.subr.bf16.mxu1 %v2848_v10 }
 0x8ce   :  { %2851 = vmatpush3.bf16.msra.mxu1 %v2848_v10 }
 0x8cf   :  { %2885 = vmatprep.subr.bf16.mxu1 %v2884_v39 }
 0x99a   :  { %v2600_v50 = vpop.f32.mrb[10].mxu1 }
 0x99b   :  { %v894_v52 = vpop.f32.mrb[11].mxu1  ;;  %v904_v53 = vadd.f32 %v2600_v50, %v3331_v48  ;;  %v1080_v50 = vld [vmem:[%s3806_s14 + $0x60] sm:$0xff] }
 0x99c   :  { %v903_v54 = vadd.f32 %v894_v52, %v3324_v43 }
 0x99d   :  { %v3453_v56 = vadd.f32 %v2354_v51, %v904_v53  ;;  %v1082_v53 = vld [vmem:[%s3806_s14 + $0x70] sm:$0xff] }
 0x99e   :  { %v3451_v55 = vadd.f32 %v2354_v51, %v903_v54  ;;  %v1081_v51 = vld [vmem:[%s3806_s14 + $0x68] sm:$0xff]  ;;  %v1083_v54 = vld [vmem:[%s3806_s14 + $0x78] sm:$0xff] }
 0x99f   :  { %v919_v58 = vsel %vm192_vm2, %v3453_v56, 0.0  ;;  %v2876_v52 = vpack.c.bf16 %v1081_v51, %v1080_v50 }
 0x9a0   :  { %v916_v57 = vsel %vm188_vm1, %v3451_v55, 0.0 }
 0x9a1   :  { %917 = vadd.xlane.f32.xlu0 %v916_v57  ;;  %2877 = vmatprep.subr.bf16.mxu0 %v2876_v52  ;;  %v2880_v57 = vpack.c.bf16 %v1083_v54, %v1082_v53  ;;  %v2364_v54 = vld [vmem:[%s3835_s5 + $0x1] ss:$0 sm:$0xff] }
 0x9a2   :  { %2879 = vmatpush3.bf16.msra.mxu0 %v2876_v52  ;;  %v2363_v52 = vld [vmem:[%s3834_s4 + $0x1] ss:$0 sm:$0xff] }
 0x9a3   :  { %2881 = vmatprep.subr.bf16.mxu0 %v2880_v57 }
 0x9a5   :  { %920 = vadd.xlane.f32.xlu0 %v919_v58  ;;  %v2357_v58 = vld [vmem:[%s3805_s13] ss:$0 sm:$0xff] }
 0x9a6   :  { %2883 = vmatpush3.bf16.msra.mxu0 %v2880_v57 }
 0xa2e   :  { %v918_v59 = vpop.xlane.xlu0 %917 }
 0xa2f   :  { %v922_v60 = vmul.f32 0.03125, %v918_v59 }
 0xa31   :  { %v924_v62 = vsub.f32 %v3451_v55, %v922_v60 }
 0xa32   :  { %v921_v63 = vpop.xlane.xlu0 %920 }
 0xa33   :  { %v923_v48 = vmul.f32 0.03125, %v921_v63  ;;  %v926_v0 = vmul.f32 %v924_v62, %v924_v62 }
 0xa35   :  { %v925_v43 = vsub.f32 %v3453_v56, %v923_v48  ;;  %v928_v1 = vsel %vm188_vm1, %v926_v0, 0.0 }
 0xa36   :  { %929 = vadd.xlane.f32.xlu0 %v928_v1 }
 0xa37   :  { %v927_v2 = vmul.f32 %v925_v43, %v925_v43 }
 0xa39   :  { %v931_v4 = vsel %vm192_vm2, %v927_v2, 0.0 }
 0xa3a   :  { %932 = vadd.xlane.f32.xlu0 %v931_v4 }
 0xac3   :  { %v930_v11 = vpop.xlane.xlu0 %929 }
 0xac4   :  { %v934_v12 = vmul.f32 0.03125, %v930_v11 }
 0xac6   :  { %v936_v13 = vadd.f32 1e-12, %v934_v12 }
 0xac7   :  { %v933_v14 = vpop.xlane.xlu0 %932 }
 0xac8   :  { %3038 = vrsqrt.f32 %v936_v13  ;;  %v935_v15 = vmul.f32 0.03125, %v933_v14 }
 0xaca   :  { %v937_v16 = vadd.f32 1e-12, %v935_v15 }
 0xacc   :  { %3040 = vrsqrt.f32 %v937_v16 }
 0xad2   :  { %v3039_v17 = vpop.eup %3038 }
 0xad3   :  { %v940_v19 = vmul.f32 %v3039_v17, %v924_v62 }
 0xad5   :  { %v948_v21 = vmul.f32 %v2355_v18, %v940_v19 }
 0xad6   :  { %v3041_v22 = vpop.eup %3040 }
 0xad7   :  { %v941_v23 = vmul.f32 %v3041_v22, %v925_v43  ;;  %v956_v24 = vadd.f32 %v2356_v20, %v948_v21 }
 0xad9   :  { %v949_v26 = vmul.f32 %v2355_v18, %v941_v23  ;;  %2609 = vmatprep.mubr.msk.f32.mxu1 %vm188_vm1, %v956_v24  ;;  %v2360_v18 = vld [vmem:[%s3807_s15] ss:$0 sm:$0xff] }
 0xadb   :  { %v957_v27 = vadd.f32 %v2356_v20, %v949_v26 }
 0xadd   :  { %2610 = vmatmul.mubr.msk.f32.vlgmr.msra.gmra.mrb[12].mxu1 %vm188_vm1, %v957_v27 }
 0xade   :  { %2887 = vmatpush3.bf16.msra.mxu1 %v2884_v39 }
 0xadf   :  { %2889 = vmatprep.subr.bf16.mxu1 %v2888_v42 }
 0xae2   :  { %2891 = vmatpush3.bf16.msra.mxu1 %v2888_v42 }
 0xbb0   :  { %v2611_v59 = vpop.f32.mrb[12].mxu1 }
 0xbb1   :  { %v1047_v60 = vadd.f32 %v2611_v59, %v2357_v58  ;;  %v1041_v62 = vpop.f32.mrb[13].mxu1 }
 0xbb2   :  { %v1042_v63 = vadd.f32 %v2357_v58, %v1041_v62 }
 0xbb3   :  { %v1051_v48 = vmul.f32 %v1047_v60, %v1047_v60 }
 0xbb4   :  { %v1050_v0 = vmul.f32 %v1042_v63, %v1042_v63 }
 0xbb5   :  { %v1053_v43 = vmul.f32 %v1051_v48, %v1047_v60  ;;  %v2370_v48 = vld [vmem:[%s3799_s7 + $0x1] ss:$0 sm:$0xff]  ;;  %s3841_s7 = smov 48  }
 0xbb6   :  { %v1052_v1 = vmul.f32 %v1050_v0, %v1042_v63 }
 0xbb7   :  { %v1055_v2 = vmul.f32 0.044715, %v1053_v43 }
 0xbb8   :  { %v1054_v4 = vmul.f32 0.044715, %v1052_v1 }
 0xbb9   :  { %v1057_v5 = vadd.f32 %v1055_v2, %v1047_v60 }
 0xbba   :  { %v1056_v6 = vadd.f32 %v1054_v4, %v1042_v63 }
 0xbbb   :  { %v1059_v7 = vmul.f32 0.7978846, %v1057_v5 }
 0xbbc   :  { %v1058_v8 = vmul.f32 0.7978846, %v1056_v6 }
 0xbbd   :  { %3042 = vtanh.f32 %v1059_v7 }
 0xbbe   :  { %3044 = vtanh.f32 %v1058_v8 }
 0xbc7   :  { %v3043_v9 = vpop.eup %3042 }
 0xbc8   :  { %v3045_v10 = vpop.eup %3044  ;;  %v1063_v11 = vadd.f32 1.0, %v3043_v9 }
 0xbc9   :  { %v1062_v12 = vadd.f32 1.0, %v3045_v10 }
 0xbca   :  { %v1065_v13 = vmul.f32 0.5, %v1063_v11 }
 0xbcb   :  { %v1064_v14 = vmul.f32 0.5, %v1062_v12 }
 0xbcc   :  { %v1067_v16 = vmul.f32 %v1065_v13, %v1047_v60 }
 0xbcd   :  { %v1066_v15 = vmul.f32 %v1064_v14, %v1042_v63 }
 0xbcf   :  { %2644 = vmatprep.mubr.f32.mxu0 %v1066_v15 }
 0xbd0   :  { %2645 = vmatmul.mubr.f32.vlgmr.msra.gmra.mrb[4].mxu0 %v1067_v16 }
 0xca3   :  { %v2646_v17 = vpop.f32.mrb[4].mxu0 }
 0xca4   :  { %v1160_v19 = vadd.f32 %v2646_v17, %v3453_v56  ;;  %v1150_v20 = vpop.f32.mrb[5].mxu0 }
 0xca5   :  { %v1159_v21 = vadd.f32 %v1150_v20, %v3451_v55 }
 0xca6   :  { %v1169_v22 = vadd.f32 %v2360_v18, %v1160_v19 }
 0xca7   :  { %v3539_v23 = vadd.f32 %v2360_v18, %v1159_v21 }
 0xca8   :  { %v1177_v24 = vsel %vm192_vm2, %v1169_v22, 0.0 }
 0xca9   :  { %1178 = vadd.xlane.f32.xlu0 %v1177_v24  ;;  %v1174_v26 = vsel %vm188_vm1, %v3539_v23, 0.0 }
 0xcaa   :  { %1175 = vadd.xlane.f32.xlu1 %v1174_v26 }
 0xd36   :  { %v1179_v27 = vpop.xlane.xlu0 %1178 }
 0xd37   :  { %v1181_v28 = vmul.f32 0.03125, %v1179_v27  ;;  %v1176_v25 = vpop.xlane.xlu1 %1175 }
 0xd38   :  { %v1180_v30 = vmul.f32 0.03125, %v1176_v25 }
 0xd39   :  { %v1183_v31 = vsub.f32 %v1169_v22, %v1181_v28 }
 0xd3a   :  { %v1182_v56 = vsub.f32 %v3539_v23, %v1180_v30 }
 0xd3b   :  { %v1185_v34 = vmul.f32 %v1183_v31, %v1183_v31 }
 0xd3c   :  { %v1184_v32 = vmul.f32 %v1182_v56, %v1182_v56 }
 0xd3d   :  { %v1189_v35 = vsel %vm192_vm2, %v1185_v34, 0.0 }
 0xd3e   :  { %v1186_v55 = vsel %vm188_vm1, %v1184_v32, 0.0 }
 0xd3f   :  { %1187 = vadd.xlane.f32.xlu0 %v1186_v55 }
 0xd43   :  { %1190 = vadd.xlane.f32.xlu0 %v1189_v35 }
 0xdcc   :  { %v1188_v44 = vpop.xlane.xlu0 %1187 }
 0xdcd   :  { %v1192_v45 = vmul.f32 0.03125, %v1188_v44 }
 0xdcf   :  { %v1194_v46 = vadd.f32 1e-12, %v1192_v45 }
 0xdd0   :  { %v1191_v47 = vpop.xlane.xlu0 %1190 }
 0xdd1   :  { %3046 = vrsqrt.f32 %v1194_v46  ;;  %v1193_v49 = vmul.f32 0.03125, %v1191_v47 }
 0xdd3   :  { %v1195_v50 = vadd.f32 1e-12, %v1193_v49 }
 0xdd5   :  { %3048 = vrsqrt.f32 %v1195_v50 }
 0xddb   :  { %v3047_v51 = vpop.eup %3046 }
 0xddc   :  { %v1198_v53 = vmul.f32 %v3047_v51, %v1182_v56 }
 0xdde   :  { %v1206_v57 = vmul.f32 %v2363_v52, %v1198_v53 }
 0xddf   :  { %v3049_v58 = vpop.eup %3048 }
 0xde0   :  { %v1199_v59 = vmul.f32 %v3049_v58, %v1183_v31  ;;  %v1214_v60 = vadd.f32 %v2364_v54, %v1206_v57 }
 0xde2   :  { %v1207_v62 = vmul.f32 %v2363_v52, %v1199_v59  ;;  %2655 = vmatprep.mubr.msk.f32.mxu1 %vm188_vm1, %v1214_v60 }
 0xde4   :  { %v1215_v63 = vadd.f32 %v2364_v54, %v1207_v62 }
 0xde6   :  { %2656 = vmatmul.mubr.msk.f32.vlgmr.msra.gmra.mrb[14].mxu1 %vm188_vm1, %v1215_v63 }
 0xeb9   :  { %v2657_v0 = vpop.f32.mrb[14].mxu1 }
 0xeba   :  { %v1307_v43 = vadd.f32 %v2657_v0, %v2370_v48  ;;  %v1301_v1 = vpop.f32.mrb[15].mxu1 }
 0xebb   :  { %v1302_v2 = vadd.f32 %v2370_v48, %v1301_v1 }
 0xebd   :  { %2662 = vmatprep.mubr.msk.f32.mxu1 %vm335_vm3, %v1302_v2  ;;  %v3571_v4 = vpack.i.bf16 %v1307_v43, %v1302_v2 }
 0xebf   :  { %3004 = vrot.lane.b32.xlu1 %v3571_v4, %s3100_s26  ;;  %2999 = vrot.lane.b32.xlu0 %v3571_v4, %s3099_s25 }
 0xec3   :  { %1518 = vrot.lane.b32.xlu0 %v1302_v2, %s3101_s2  ;;  %v2373_v2 = vld [vmem:[%s3800_s8 + $0x20] sm:$0xff] }
 0xec7   :  { %1520 = vrot.lane.b32.xlu0 %v1307_v43, %s3101_s2 }
 0xf31   :  { %v3005_v5 = vpop.permute.xlu1 %3004  ;;  %v3000_v6 = vpop.permute.xlu0 %2999 }
 0xf32   :  { %v3007_v7 = vunpack.i.h.bf16 %v3005_v5  ;;  %v3006_v8 = vunpack.i.l.bf16 %v3005_v5  ;;  %v3002_v9 = vunpack.i.h.bf16 %v3000_v6  ;;  %v3001_v10 = vunpack.i.l.bf16 %v3000_v6 }
 0xf34   :  { %v2892_v11 = vpack.c.bf16 %v3002_v9, %v3001_v10  ;;  %v2904_v12 = vpack.c.bf16 %v3007_v7, %v3006_v8 }
 0xf35   :  { %v1519_v13 = vpop.permute.xlu0 %1518 }
 0xf36   :  { %2894 = vmatprep.subr.msk.bf16.mxu1 %vm3373_vm4, %v2892_v11 }
 0xf37   :  { %2897 = vmatpush3.bf16.xpose.msk.msra.mxu1 %vm3373_vm4, %v2892_v11 }
 0xf38   :  { %2906 = vmatprep.subr.msk.bf16.mxu1 %vm3373_vm4, %v2904_v12 }
 0xf39   :  { %v1521_v14 = vpop.permute.xlu0 %1520 }
 0xf3e   :  { %2663 = vmatmul.mubr.msk.f32.vlgmr.msra.gmra.mrb[16].mxu1 %vm335_vm3, %v1307_v43 }
 0xf3f   :  { %2909 = vmatpush3.bf16.xpose.msk.msra.mxu1 %vm3373_vm4, %v2904_v12  ;;  %2676 = vmatprep.mubr.msk.f32.mxu1 %vm335_vm3, %v1519_v13  ;;  %v2375_v13 = vld [vmem:[%s3800_s8 + $0x30] sm:$0xff] }
 0xf46   :  { %2677 = vmatmul.mubr.msk.f32.vlgmr.msra.gmra.mrb[18].mxu1 %vm335_vm3, %v1521_v14  ;;  %v2916_v14 = vpack.c.bf16 %v2376_v61, %v2375_v13 }
0x1011   :  { %v2664_v15 = vpop.f32.mrb[16].mxu1 }
0x1012   :  { %v1395_v16 = vpop.f32.mrb[17].mxu1  ;;  %v1405_v17 = vmul.f32 0.25, %v2664_v15 }
0x1013   :  { %v1404_v18 = vmul.f32 0.25, %v1395_v16 }
0x1014   :  { %v1407_v21 = vadd.f32 %v1405_v17, %v3390_v36 }
0x1015   :  { %v1406_v19 = vadd.f32 %v1404_v18, %v3385_v33 }
0x1016   :  { %v1411_v27 = vsel %vm427_vm6, %v1407_v21, -inf }
0x1017   :  { %v1408_v20 = vsel %vm423_vm5, %v1406_v19, -inf }
0x1018   :  { %1409 = vmax.xlane.f32.xlu0 %v1408_v20 }
0x1019   :  { %v2678_v22 = vpop.f32.mrb[18].mxu1 }
0x101a   :  { %v1610_v24 = vmul.f32 0.25, %v2678_v22  ;;  %v1600_v29 = vpop.f32.mrb[19].mxu1 }
0x101b   :  { %v1609_v26 = vmul.f32 0.25, %v1600_v29  ;;  %v2396_v29 = vld [vmem:[%s3801_s9 + $0x1] ss:$0 sm:$0xff] }
0x101c   :  { %1412 = vmax.xlane.f32.xlu0 %v1411_v27  ;;  %v1612_v28 = vadd.f32 %v1610_v24, %v3390_v36 }
0x101d   :  { %v1611_v25 = vadd.f32 %v1609_v26, %v3385_v33 }
0x101e   :  { %v1616_v30 = vsel %vm427_vm6, %v1612_v28, -inf }
0x101f   :  { %v1613_v31 = vsel %vm423_vm5, %v1611_v25, -inf }
0x1020   :  { %1614 = vmax.xlane.f32.xlu1 %v1613_v31  ;;  %1617 = vmax.xlane.f32.xlu0 %v1616_v30 }
0x10a5   :  { %v1410_v56 = vpop.xlane.xlu0 %1409 }
0x10a6   :  { %v1414_v32 = vsub.f32 %v1406_v19, %v1410_v56 }
0x10a8   :  { %v1416_v55 = vmul.f32 1.442695, %v1414_v32 }
0x10a9   :  { %v1413_v34 = vpop.xlane.xlu0 %1412 }
0x10aa   :  { %3050 = vpow2.f32 %v1416_v55  ;;  %v1415_v35 = vsub.f32 %v1407_v21, %v1413_v34  ;;  %v2401_v55 = vld [vmem:[%s3804_s12 + $0x20] sm:$0xff] }
0x10ac   :  { %v1418_v37 = vmul.f32 1.442695, %v1415_v35  ;;  %v2403_v35 = vld [vmem:[%s3804_s12 + $0x30] sm:$0xff] }
0x10ad   :  { %v1615_v38 = vpop.xlane.xlu1 %1614  ;;  %v1618_v39 = vpop.xlane.xlu0 %1617 }
0x10ae   :  { %3052 = vpow2.f32 %v1418_v37  ;;  %v1619_v40 = vsub.f32 %v1611_v25, %v1615_v38  ;;  %v1620_v36 = vsub.f32 %v1612_v28, %v1618_v39  ;;  %v2404_v37 = vld [vmem:[%s3804_s12 + $0x38] sm:$0xff]  ;;  %v3106_v39 = vmov 0.0  }
0x10af   :  { %v2928_v38 = vpack.c.bf16 %v2404_v37, %v2403_v35  ;;  %v2147_v37 = vld [vmem:[%s3810_s18 + $0x10] sm:$0xff] }
0x10b0   :  { %v1623_v41 = vmul.f32 1.442695, %v1620_v36  ;;  %v1621_v33 = vmul.f32 1.442695, %v1619_v40  ;;  %v2408_v40 = vld [vmem:[%s3806_s14 + $0x80] sm:$0xff]  ;;  %v2409_v36 = vld [vmem:[%s3806_s14 + $0x88] sm:$0xff] }
0x10b2   :  { %3054 = vpow2.f32 %v1623_v41  ;;  %v2931_v41 = vpack.c.bf16 %v2409_v36, %v2408_v40 }
0x10b3   :  { %3056 = vpow2.f32 %v1621_v33 }
0x10b4   :  { %v3051_v42 = vpop.eup %3050 }
0x10b5   :  { %v1420_v44 = vsel %vm423_vm5, %v3051_v42, 0.0 }
0x10b6   :  { %1421 = vadd.xlane.f32.xlu0 %v1420_v44 }
0x10b8   :  { %v3053_v45 = vpop.eup %3052 }
0x10b9   :  { %v1423_v46 = vsel %vm427_vm6, %v3053_v45, 0.0 }
0x10ba   :  { %1424 = vadd.xlane.f32.xlu1 %v1423_v46  ;;  %v2399_v46 = vld [vmem:[%s3802_s10 + $0x1] ss:$0 sm:$0xff] }
0x10bc   :  { %v3055_v47 = vpop.eup %3054 }
0x10bd   :  { %v1628_v49 = vsel %vm427_vm6, %v3055_v47, 0.0  ;;  %v3057_v50 = vpop.eup %3056 }
0x10be   :  { %1629 = vadd.xlane.f32.xlu0 %v1628_v49  ;;  %v1625_v51 = vsel %vm423_vm5, %v3057_v50, 0.0  ;;  %v2400_v49 = vld [vmem:[%s3803_s11 + $0x1] ss:$0 sm:$0xff] }
0x10c2   :  { %1626 = vadd.xlane.f32.xlu0 %v1625_v51 }
0x10cb   :  { %3009 = vrot.lane.b32.xlu1 %v3571_v4, %s3102_s23 }
0x10d8   :  { %3014 = vrot.lane.b32.xlu0 %v3571_v4, %s3841_s7  ;;  %v2374_v4 = vld [vmem:[%s3800_s8 + $0x28] sm:$0xff] }
0x10d9   :  { %v2920_v8 = vpack.c.bf16 %v2374_v4, %v2373_v2  ;;  %v2419_v2 = vld [vmem:[%s3806_s14 + $0xd8] sm:$0xff] }
0x1143   :  { %v1422_v52 = vpop.xlane.xlu0 %1421 }
0x1144   :  { %3058 = vrcp.f32 %v1422_v52  ;;  %v2410_v52 = vld [vmem:[%s3806_s14 + $0x90] sm:$0xff] }
0x1147   :  { %v1425_v53 = vpop.xlane.xlu1 %1424 }
0x1148   :  { %3060 = vrcp.f32 %v1425_v53  ;;  %v2411_v53 = vld [vmem:[%s3806_s14 + $0x98] sm:$0xff] }
0x114b   :  { %v3010_v54 = vpop.permute.xlu1 %3009  ;;  %v1630_v59 = vpop.xlane.xlu0 %1629 }
0x114c   :  { %v3012_v57 = vunpack.i.h.bf16 %v3010_v54  ;;  %v3011_v58 = vunpack.i.l.bf16 %v3010_v54  ;;  %3062 = vrcp.f32 %v1630_v59  ;;  %v2934_v54 = vpack.c.bf16 %v2411_v53, %v2410_v52  ;;  %v2232_v52 = vld [vmem:[%s3812_s20 + $0x10] sm:$0xff] }
0x114e   :  { %v3059_v60 = vpop.eup %3058  ;;  %v2898_v62 = vpack.c.bf16 %v3012_v57, %v3011_v58  ;;  %v2412_v57 = vld [vmem:[%s3806_s14 + $0xa0] sm:$0xff]  ;;  %v2413_v58 = vld [vmem:[%s3806_s14 + $0xa8] sm:$0xff] }
0x114f   :  { %v1427_v63 = vmul.f32 %v3059_v60, %v3051_v42  ;;  %v1627_v48 = vpop.xlane.xlu0 %1626  ;;  %v2937_v59 = vpack.c.bf16 %v2413_v58, %v2412_v57  ;;  %v2414_v60 = vld [vmem:[%s3806_s14 + $0xb0] sm:$0xff] }
0x1150   :  { %2900 = vmatprep.subr.msk.bf16.mxu0 %vm3400_vm9, %v2898_v62  ;;  %3064 = vrcp.f32 %v1627_v48  ;;  %v2416_v48 = vld [vmem:[%s3806_s14 + $0xc0] sm:$0xff] }
0x1151   :  { %2903 = vmatpush3.bf16.msk.msra.mxu0 %vm3400_vm9, %v2898_v62  ;;  %2669 = vmatprep.mubr.msk.f32.mxu0 %vm423_vm5, %v1427_v63  ;;  %v2415_v62 = vld [vmem:[%s3806_s14 + $0xb8] sm:$0xff] }
0x1152   :  { %v3061_v0 = vpop.eup %3060  ;;  %2917 = vmatprep.subr.bf16.mxu0 %v2916_v14  ;;  %v2940_v63 = vpack.c.bf16 %v2415_v62, %v2414_v60 }
0x1153   :  { %v1429_v43 = vmul.f32 %v3061_v0, %v3053_v45  ;;  %v3015_v1 = vpop.permute.xlu0 %3014  ;;  %v2417_v0 = vld [vmem:[%s3806_s14 + $0xc8] sm:$0xff] }
0x1154   :  { %v3017_v5 = vunpack.i.h.bf16 %v3015_v1  ;;  %v3016_v6 = vunpack.i.l.bf16 %v3015_v1  ;;  %v2418_v1 = vld [vmem:[%s3806_s14 + $0xd0] sm:$0xff] }
0x1155   :  { %2670 = vmatmul.mubr.msk.f32.vlgmr.msra.gmra.mrb[6].mxu0 %vm423_vm5, %v1429_v43  ;;  %v2943_v43 = vpack.c.bf16 %v2417_v0, %v2416_v48  ;;  %v2946_v4 = vpack.c.bf16 %v2419_v2, %v2418_v1 }
0x1156   :  { %v2910_v7 = vpack.c.bf16 %v3017_v5, %v3016_v6  ;;  %v3063_v9 = vpop.eup %3062  ;;  %2919 = vmatpush3.bf16.msra.mxu0 %v2916_v14  ;;  %v2420_v5 = vld [vmem:[%s3806_s14 + $0xe0] sm:$0xff]  ;;  %v2421_v6 = vld [vmem:[%s3806_s14 + $0xe8] sm:$0xff] }
0x1157   :  { %v1634_v12 = vmul.f32 %v3063_v9, %v3055_v47  ;;  %2924 = vmatprep.subr.bf16.mxu0 %v3098_v3  ;;  %v2423_v9 = vld [vmem:[%s3806_s14 + $0xf8] sm:$0xff] }
0x1158   :  { %2912 = vmatprep.subr.msk.bf16.mxu1 %vm3400_vm9, %v2910_v7 }
0x1159   :  { %2915 = vmatpush3.bf16.msk.msra.mxu1 %vm3400_vm9, %v2910_v7  ;;  %v2949_v7 = vpack.c.bf16 %v2421_v6, %v2420_v5 }
0x115a   :  { %v3065_v10 = vpop.eup %3064  ;;  %2921 = vmatprep.subr.bf16.mxu1 %v2920_v8 }
0x115b   :  { %v1632_v11 = vmul.f32 %v3065_v10, %v3057_v50 }
0x115d   :  { %2683 = vmatprep.mubr.msk.f32.mxu1 %vm423_vm5, %v1632_v11  ;;  %v2406_v11 = vld [vmem:[%s3805_s13 + $0x1] ss:$0 sm:$0xff] }
0x115e   :  { %2684 = vmatmul.mubr.msk.f32.vlgmr.msra.gmra.mrb[20].mxu1 %vm423_vm5, %v1634_v12 }
0x115f   :  { %2923 = vmatpush3.bf16.msra.mxu1 %v2920_v8  ;;  %v2422_v8 = vld [vmem:[%s3806_s14 + $0xf0] sm:$0xff] }
0x1160   :  { %2930 = vmatprep.subr.bf16.mxu1 %v3098_v3  ;;  %v2952_v10 = vpack.c.bf16 %v2423_v9, %v2422_v8 }
0x1228   :  { %v2671_v15 = vpop.f32.mrb[6].mxu0 }
0x1229   :  { %v1509_v16 = vpop.f32.mrb[7].mxu0 }
0x122a   :  { %2697 = vmatprep.mubr.msk.f32.mxu1 %vm335_vm3, %v1509_v16 }
0x122b   :  { %2698 = vmatmul.mubr.msk.f32.vlgmr.msra.gmra.mrb[22].mxu1 %vm335_vm3, %v2671_v15 }
0x122c   :  { %2743 = vmatprep.mubr.msk.f32.mxu1 %vm3105_vm10, %v3106_v39  ;;  %2932 = vmatpush3.bf16.msra.mxu1 %v2931_v41 }
0x122d   :  { %2933 = vmatprep.subr.bf16.mxu1 %v3098_v3 }
0x1230   :  { %2935 = vmatpush3.bf16.msra.mxu1 %v2934_v54  ;;  %v2233_v54 = vld [vmem:[%s3812_s20 + $0x18] sm:$0xff] }
0x1231   :  { %v2685_v17 = vpop.f32.mrb[20].mxu1  ;;  %2936 = vmatprep.subr.bf16.mxu1 %v3098_v3  ;;  %v2964_v57 = vpack.c.bf16 %v2233_v54, %v2232_v52 }
0x1232   :  { %v1714_v18 = vpop.f32.mrb[21].mxu1 }
0x1233   :  { %2690 = vmatprep.mubr.msk.f32.mxu0 %vm335_vm3, %v1714_v18 }
0x1234   :  { %2691 = vmatmul.mubr.msk.f32.vlgmr.msra.gmra.mrb[8].mxu0 %vm335_vm3, %v2685_v17  ;;  %2938 = vmatpush3.bf16.msra.mxu1 %v2937_v59 }
0x1235   :  { %2708 = vmatprep.mubr.msk.f32.mxu0 %vm3105_vm10, %v3106_v39  ;;  %2939 = vmatprep.subr.bf16.mxu1 %v3098_v3 }
0x1238   :  { %2941 = vmatpush3.bf16.msra.mxu1 %v2940_v63  ;;  %v2430_v63 = vld [vmem:[%s3813_s21] ss:$0 sm:$0xff] }
0x1239   :  { %2942 = vmatprep.subr.bf16.mxu1 %v3098_v3 }
0x123c   :  { %2944 = vmatpush3.bf16.msra.mxu1 %v2943_v43 }
0x123d   :  { %2945 = vmatprep.subr.bf16.mxu1 %v3098_v3 }
0x1240   :  { %2947 = vmatpush3.bf16.msra.mxu1 %v2946_v4 }
0x1241   :  { %2948 = vmatprep.subr.bf16.mxu1 %v3098_v3 }
0x1244   :  { %2950 = vmatpush3.bf16.msra.mxu1 %v2949_v7 }
0x1245   :  { %2951 = vmatprep.subr.bf16.mxu1 %v3098_v3 }
0x1248   :  { %2953 = vmatpush3.bf16.msra.mxu1 %v2952_v10 }
0x12fe   :  { %v2699_v19 = vpop.f32.mrb[22].mxu1 }
0x12ff   :  { %v1875_v20 = vpop.f32.mrb[23].mxu1 }
0x1307   :  { %v2692_v21 = vpop.f32.mrb[8].mxu0 }
0x1308   :  { %v1795_v22 = vpop.f32.mrb[9].mxu0 }
0x1309   :  { %v1876_v24 = vadd.f32 %v1875_v20, %v1795_v22 }
0x130b   :  { %v1883_v26 = vadd.f32 %v1876_v24, %v3539_v23  ;;  %v2402_v23 = vld [vmem:[%s3804_s12 + $0x28] sm:$0xff] }
0x130c   :  { %v2925_v34 = vpack.c.bf16 %v2402_v23, %v2401_v55 }
0x130d   :  { %v3640_v27 = vadd.f32 %v2396_v29, %v1883_v26  ;;  %v2425_v29 = vld [vmem:[%s3807_s15 + $0x1] ss:$0 sm:$0xff] }
0x130e   :  { %2926 = vmatpush3.bf16.msra.mxu0 %v2925_v34  ;;  %v2145_v34 = vld [vmem:[%s3810_s18] sm:$0xff] }
0x130f   :  { %v1897_v28 = vsel %vm192_vm2, %v3640_v27, 0.0  ;;  %2927 = vmatprep.subr.bf16.mxu0 %v3098_v3 }
0x1310   :  { %1898 = vadd.xlane.f32.xlu1 %v1897_v28 }
0x1312   :  { %2929 = vmatpush3.bf16.msra.mxu0 %v2928_v38  ;;  %v2148_v38 = vld [vmem:[%s3810_s18 + $0x18] sm:$0xff] }
0x1313   :  { %2954 = vmatprep.subr.bf16.mxu0 %v3098_v3  ;;  %v2958_v40 = vpack.c.bf16 %v2148_v38, %v2147_v37 }
0x139d   :  { %v1899_v25 = vpop.xlane.xlu1 %1898 }
0x139e   :  { %v1900_v30 = vmul.f32 0.03125, %v1899_v25 }
0x13a0   :  { %v1901_v31 = vsub.f32 %v3640_v27, %v1900_v30 }
0x13a2   :  { %v1902_v56 = vmul.f32 %v1901_v31, %v1901_v31 }
0x13a4   :  { %v1903_v32 = vsel %vm192_vm2, %v1902_v56, 0.0 }
0x13a5   :  { %1904 = vadd.xlane.f32.xlu0 %v1903_v32 }
0x1432   :  { %v1905_v33 = vpop.xlane.xlu0 %1904 }
0x1433   :  { %v1906_v42 = vmul.f32 0.03125, %v1905_v33 }
0x1435   :  { %v1907_v44 = vadd.f32 1e-12, %v1906_v42 }
0x1437   :  { %3066 = vrsqrt.f32 %v1907_v44  ;;  %v2426_v44 = vld [vmem:[%s3808_s16] ss:$0 sm:$0xff] }
0x1441   :  { %v3067_v45 = vpop.eup %3066 }
0x1442   :  { %v1909_v47 = vmul.f32 %v3067_v45, %v1901_v31 }
0x1444   :  { %v1916_v50 = vmul.f32 %v2399_v46, %v1909_v47  ;;  %v2427_v46 = vld [vmem:[%s3809_s17] ss:$0 sm:$0xff] }
0x1446   :  { %v1923_v51 = vadd.f32 %v2400_v49, %v1916_v50  ;;  %v2230_v50 = vld [vmem:[%s3812_s20] sm:$0xff] }
0x1448   :  { %2709 = vmatmul.mubr.msk.f32.vlgmr.msra.gmra.mrb[10].mxu0 %vm188_vm1, %v1923_v51  ;;  %v2231_v51 = vld [vmem:[%s3812_s20 + $0x8] sm:$0xff]  ;;  %s3107_s20 = smov [#allocation2]  }
0x1449   :  { %2754 = vmatprep.mubr.msk.f32.mxu0 %vm3105_vm10, %v3106_v39  ;;  %v2961_v53 = vpack.c.bf16 %v2231_v51, %v2230_v50  ;;  %s2321_s30 = sshll.u32 %s3107_s20, 4  ;;  %s2322_s30 = int_to_ptr.vmem [resolvable:$true] %s2321_s30 }
0x144a   :  { %s3074_s14 = scalar_lea.vmem %s2322_s30, 32  ;;  %p3079_p1 = scmp.lt.s32.totalorder %s2322_s30, %s2322_s30 }
0x144b   :  { %p3075_p0 = scmp.ne.s32.totalorder %s2322_s30, %s3074_s14  ;;  %p3080_p2 = scmp.lt.s32.totalorder %s3074_s14, %s3074_s14 }
0x144d   :  { %p3081_p3 = por %p3080_p2, %p3079_p1 }
0x144f   :  { %p3082_p4 = pnand %p3081_p3, %p3075_p0 }
0x151b   :  { %v2006_v12 = vpop.f32.mrb[10].mxu0 }
0x151c   :  { %v2007_v13 = vadd.f32 %v2406_v11, %v2006_v12  ;;  %v2710_v61 = vpop.f32.mrb[11].mxu0 }
0x151e   :  { %v2010_v14 = vmul.f32 %v2007_v13, %v2007_v13 }
0x1520   :  { %v2011_v15 = vmul.f32 %v2010_v14, %v2007_v13 }
0x1522   :  { %v2012_v16 = vmul.f32 0.044715, %v2011_v15 }
0x1524   :  { %v2013_v17 = vadd.f32 %v2012_v16, %v2007_v13 }
0x1526   :  { %v2014_v18 = vmul.f32 0.7978846, %v2013_v17 }
0x1528   :  { %3068 = vtanh.f32 %v2014_v18 }
0x1532   :  { %v3069_v19 = vpop.eup %3068 }
0x1533   :  { %v2016_v20 = vadd.f32 1.0, %v3069_v19 }
0x1535   :  { %v2017_v21 = vmul.f32 0.5, %v2016_v20 }
0x1537   :  { %v2018_v22 = vmul.f32 %v2017_v21, %v2007_v13 }
0x1539   :  { %2744 = vmatmul.mubr.f32.vlgmr.msra.gmra.mrb[24].mxu1 %v2018_v22 }
0x160c   :  { %v2102_v24 = vpop.f32.mrb[24].mxu1 }
0x160d   :  { %v2106_v26 = vadd.f32 %v2102_v24, %v3640_v27  ;;  %v2745_v28 = vpop.f32.mrb[25].mxu1  ;;  %v2146_v27 = vld [vmem:[%s3810_s18 + $0x8] sm:$0xff] }
0x160e   :  { %v2955_v35 = vpack.c.bf16 %v2146_v27, %v2145_v34 }
0x160f   :  { %v2115_v25 = vadd.f32 %v2425_v29, %v2106_v26 }
0x1610   :  { %2956 = vmatpush3.bf16.msra.mxu0 %v2955_v35 }
0x1611   :  { %v2118_v30 = vsel %vm192_vm2, %v2115_v25, 0.0  ;;  %2957 = vmatprep.subr.bf16.mxu0 %v3098_v3 }
0x1612   :  { %2119 = vadd.xlane.f32.xlu1 %v2118_v30 }
0x1614   :  { %2959 = vmatpush3.bf16.msra.mxu0 %v2958_v40 }
0x1615   :  { %2960 = vmatprep.subr.bf16.mxu0 %v3098_v3 }
0x169f   :  { %v2120_v31 = vpop.xlane.xlu1 %2119 }
0x16a0   :  { %v2121_v56 = vmul.f32 0.03125, %v2120_v31 }
0x16a2   :  { %v2122_v32 = vsub.f32 %v2115_v25, %v2121_v56 }
0x16a4   :  { %v2123_v55 = vmul.f32 %v2122_v32, %v2122_v32 }
0x16a6   :  { %v2124_v23 = vsel %vm192_vm2, %v2123_v55, 0.0 }
0x16a7   :  { %2125 = vadd.xlane.f32.xlu0 %v2124_v23 }
0x1734   :  { %v2126_v36 = vpop.xlane.xlu0 %2125 }
0x1735   :  { %v2127_v41 = vmul.f32 0.03125, %v2126_v36 }
0x1737   :  { %v2128_v33 = vadd.f32 1e-12, %v2127_v41 }
0x1739   :  { %3070 = vrsqrt.f32 %v2128_v33 }
0x1743   :  { %v3071_v42 = vpop.eup %3070 }
0x1744   :  { %v2130_v45 = vmul.f32 %v3071_v42, %v2122_v32 }
0x1746   :  { %v2137_v47 = vmul.f32 %v2426_v44, %v2130_v45 }
0x1748   :  { %v2144_v49 = vadd.f32 %v2427_v46, %v2137_v47 }
0x174a   :  { %2755 = vmatmul.mubr.msk.f32.vlgmr.msra.gmra.mrb[12].mxu0 %vm188_vm1, %v2144_v49 }
0x174b   :  { %2765 = vmatprep.mubr.msk.f32.mxu0 %vm3105_vm10, %v3106_v39  ;;  %2962 = vmatpush3.bf16.msra.mxu0 %v2961_v53  ;;  %v2428_v39 = vld [vmem:[%s3811_s19] ss:$0 sm:$0xff] }
0x174c   :  { %2963 = vmatprep.subr.bf16.mxu0 %v3098_v3 }
0x174f   :  { %2965 = vmatpush3.bf16.msra.mxu0 %v2964_v57 }
0x181d   :  { %v2225_v58 = vpop.f32.mrb[12].mxu0 }
0x181e   :  { %v2226_v59 = vadd.f32 %v2428_v39, %v2225_v58  ;;  %v2756_v60 = vpop.f32.mrb[13].mxu0 }
0x1820   :  { %3072 = vtanh.f32 %v2226_v59 }
0x182a   :  { %v3073_v62 = vpop.eup %3072 }
0x182b   :  { %2766 = vmatmul.mubr.msk.f32.vlgmr.msra.gmra.mrb[14].mxu0 %vm188_vm1, %v3073_v62 }
0x18fe   :  { %v2310_v48 = vpop.f32.mrb[14].mxu0 }
0x18ff   :  { %v2311_v3 = vadd.f32 %v2430_v63, %v2310_v48  ;;  %v2767_v0 = vpop.f32.mrb[15].mxu0 }
0x1901   :  { %2314 = vst [vmem:[#allocation2] sm:$0x3] %v2311_v3 }
0x1902   :  { %3085 = shalt.err (!%p3082_p4)
}
0x1903   :  { %s3086_s13 = scalar_lea.hbm %s3814_s22, 32 }
0x1904   :  { %p3087_p5 = scmp.ne.s32.totalorder %s3814_s22, %s3086_s13  ;;  %p3090_p6 = scmp.lt.u32.totalorder %s3086_s13, %s3814_s22 }
0x1906   :  { %p3092_p7 = pnand %p3090_p6, %p3087_p5 }
0x1908   :  { %3095 = shalt.err (!%p3092_p7)
}
0x1909   :  { %2324 = dma.vmem_to_hbm [thread:$0]  %s2322_s30, 32, %s3814_s22, [#allocation3]  }
0x190a   :  { %3096 = dma.done.wait [#allocation3], 32  }
0x190b   :  { %3097 = vsyncadd [#allocation3], 4294967264 }
0x190c   :  { %2328 = vsyncpa [#allocation3], 1 }

</bundles_post_ra>
